<compile_context>
chip_gen: v7x
topology: tpu7x:2x2x1
jax: 0.10.0
libtpu: 0.0.40
codegen_flags: <defaults>
</compile_context>

<pallas_src>
import functools

import jax
import jax.numpy as jnp
from jax.experimental import pallas as pl
from jax.experimental.pallas import tpu as pltpu

EPSILON = 1e-10
LANE = 128


def _discriminator_kernel(tok_ref, hid_ref, w_ref, b_ref, out_ref,
                          acc_ref, cnt_ref, *, num_classes):
    # tok_ref: (TB, TT) int32   -- token ids (0 == padding)
    # hid_ref: (TB, TT, E) bf16 -- encoder hidden states tile
    # w_ref:   (E, CP) f32      -- ClassificationHead weight (class-padded)
    # b_ref:   (1, CP) f32      -- ClassificationHead bias   (class-padded)
    # out_ref: (TB, CP) f32     -- log_softmax(logits), padded classes = -inf
    # acc_ref: (TB, E) f32      -- resident masked-sum accumulator
    # cnt_ref: (TB, 1) f32      -- resident valid-token count
    t = pl.program_id(1)

    @pl.when(t == 0)
    def _init():
        acc_ref[...] = jnp.zeros_like(acc_ref)
        cnt_ref[...] = jnp.zeros_like(cnt_ref)

    tokens = tok_ref[...]                                   # (TB, TT)
    hid = hid_ref[...].astype(jnp.float32)                  # (TB, TT, E), f32 accum
    mask = (tokens != 0).astype(jnp.float32)                # (TB, TT)

    # Fused mask-multiply + reduction over the sequence tile, accumulated into
    # the resident scratch (exact f32 path; no persistent (TB,TT,E) temporary).
    acc_ref[...] += jnp.sum(hid * mask[:, :, None], axis=1)        # (TB, E)
    cnt_ref[...] += jnp.sum(mask, axis=1, keepdims=True)           # (TB, 1)

    @pl.when(t == pl.num_programs(1) - 1)
    def _finalize():
        # avg_hidden = sum(masked_hidden) / (sum(mask) + EPSILON)   (EUP divide)
        inv_cnt = pl.reciprocal(cnt_ref[...] + EPSILON, approx=False)
        avg = acc_ref[...] * inv_cnt                                # (TB, E)

        # ClassificationHead: Linear(E -> C), lane-dense (C padded to 128).
        logits = jnp.dot(avg, w_ref[...],
                         preferred_element_type=jnp.float32) + b_ref[...]

        # Exclude the padded classes from the softmax normalization.
        col = jax.lax.broadcasted_iota(jnp.int32, logits.shape, 1)
        valid = col < num_classes
        logits = jnp.where(valid, logits, -jnp.inf)

        m = jnp.max(logits, axis=-1, keepdims=True)
        shifted = logits - m
        expv = jnp.where(valid, jnp.exp(shifted), 0.0)
        lse = jnp.log(jnp.sum(expv, axis=-1, keepdims=True))
        out_ref[...] = shifted - lse


def discriminator_forward(tokens, hidden, w, b, *, tb=8, tt=None,
                          vmem_limit_bytes=64 * 1024 * 1024):
    """tokens: (B,T) int32, hidden: (B,T,E) float, w: (E,C), b: (C,) or (1,C)."""
    B, T = tokens.shape
    E = hidden.shape[-1]
    C = w.shape[-1]

    tokens = tokens.astype(jnp.int32)
    # bf16 hidden halves HBM traffic (the dominant cost); f32 accumulation in-kernel.
    if hidden.dtype != jnp.bfloat16:
        hidden = hidden.astype(jnp.bfloat16)
    w = w.astype(jnp.float32)
    b = jnp.asarray(b, jnp.float32).reshape(1, C)

    assert tb % 8 == 0, "batch tile must be a multiple of 8 (sublane alignment)"

    # --- VMEM-aware sequence-tile choice (keeps 2x double-buffered hidden tiles
    #     comfortably inside v7x's 64 MiB VMEM; larger tiles on v5e/v6e are fine) ---
    if tt is None:
        per_buffer_budget = 12 * 1024 * 1024
        tt = 1024
        while tt > 128 and tb * tt * E * hidden.dtype.itemsize > per_buffer_budget:
            tt //= 2
    assert tt % 128 == 0, "sequence tile must be a multiple of 128 (lane alignment)"
    t_aligned = pl.cdiv(T, LANE) * LANE
    tt = min(tt, t_aligned)

    # --- pad so every block is full and lane-dense ---
    Bp = pl.cdiv(B, tb) * tb
    Tp = pl.cdiv(T, tt) * tt
    Cp = pl.cdiv(C, LANE) * LANE

    # Padding contract: padded tokens are id 0 => mask 0, so padded hidden
    # (zeros here) can never corrupt the sum or the count.
    tok_p = jnp.pad(tokens, ((0, Bp - B), (0, Tp - T)))
    hid_p = jnp.pad(hidden, ((0, Bp - B), (0, Tp - T), (0, 0)))
    w_p = jnp.pad(w, ((0, 0), (0, Cp - C)))
    b_p = jnp.pad(b, ((0, 0), (0, Cp - C)))

    grid = (Bp // tb, Tp // tt)   # T axis last => innermost reduction

    kernel = functools.partial(_discriminator_kernel, num_classes=C)
    out = pl.pallas_call(
        kernel,
        out_shape=jax.ShapeDtypeStruct((Bp, Cp), jnp.float32),
        grid_spec=pltpu.PrefetchScalarGridSpec(
            num_scalar_prefetch=0,
            grid=grid,
            in_specs=[
                pl.BlockSpec((tb, tt), lambda bi, ti: (bi, ti)),        # tokens
                pl.BlockSpec((tb, tt, E), lambda bi, ti: (bi, ti, 0)),  # hidden
                pl.BlockSpec((E, Cp), lambda bi, ti: (0, 0)),           # weight (resident)
                pl.BlockSpec((1, Cp), lambda bi, ti: (0, 0)),           # bias   (resident)
            ],
            out_specs=pl.BlockSpec((tb, Cp), lambda bi, ti: (bi, 0)),
            scratch_shapes=[
                pltpu.VMEM((tb, E), jnp.float32),   # masked-sum accumulator
                pltpu.VMEM((tb, 1), jnp.float32),   # valid-token count
            ],
        ),
        compiler_params=pltpu.CompilerParams(
            dimension_semantics=("parallel", "arbitrary"),
            vmem_limit_bytes=vmem_limit_bytes,
        ),
    )(tok_p, hid_p, w_p, b_p)

    return out[:B, :C]


def reference_forward(tokens, hidden_f32, w, b):
    mask = (tokens != 0).astype(jnp.float32)
    masked_hidden = hidden_f32 * mask[:, :, None]
    avg_hidden = jnp.sum(masked_hidden, axis=1) / (
        jnp.sum(mask, axis=1, keepdims=True) + EPSILON)
    logits = avg_hidden @ w + jnp.reshape(b, (1, -1))
    return jax.nn.log_softmax(logits, axis=-1)


if __name__ == "__main__":
    # Shapes consistent with Discriminator.forward (a small GPT-ish encoder):
    # batch=16, seq=256, embed_size=128, class_size=5.
    B, T, E, C = 16, 256, 128, 5
    VOCAB = 32

    key = jax.random.PRNGKey(0)
    k_emb, k_tok, k_w, k_b = jax.random.split(key, 4)

    # Token ids; force some zeros so the pad mask actually does something.
    tokens = jax.random.randint(k_tok, (B, T), 0, VOCAB, dtype=jnp.int32)
    tokens = tokens.at[0, -64:].set(0).at[1, -5:].set(0)

    # TODO(synk): the GPT2LMHeadModel transformer encoder has no clean Pallas
    # equivalent here; stand in with a deterministic embedding-table lookup to
    # produce the (B, T, E) hidden states the rest of forward() consumes.
    embed_table = jax.random.normal(k_emb, (VOCAB, E), dtype=jnp.float32)
    hidden = embed_table[tokens]                                # (B, T, E) f32
    hidden_bf16 = hidden.astype(jnp.bfloat16)                   # kernel input

    # ClassificationHead parameters (Linear(embed_size, class_size)).
    w = jax.random.normal(k_w, (E, C), dtype=jnp.float32) * 0.3
    b = jax.random.normal(k_b, (1, C), dtype=jnp.float32) * 0.05

    log_probs = discriminator_forward(tokens, hidden_bf16, w, b, tt=128)
    jax.block_until_ready(log_probs)

    # Reference uses the same bf16-rounded hidden values, computed in f32.
    ref = reference_forward(tokens, hidden_bf16.astype(jnp.float32), w, b)

    assert log_probs.shape == (B, C)
    assert bool(jnp.all(jnp.isfinite(log_probs)))
    # Proper log-probabilities: each row of exp(out) sums to 1.
    assert bool(jnp.allclose(jnp.sum(jnp.exp(log_probs), axis=-1), 1.0, atol=1e-3))
    # Match the pure-JAX reference (tolerance covers MXU matmul precision).
    assert bool(jnp.allclose(log_probs, ref, atol=2e-2, rtol=2e-2))

    print("KERNEL_OK")
</pallas_src>

<mosaic_0001>
module attributes {stable_mosaic.version = 11 : i64} {
  func.func @_discriminator_kernel(%arg0: i32, %arg1: i32, %arg2: memref<8x128xi32, #tpu.memory_space<vmem>>, %arg3: memref<8x128x128xbf16, #tpu.memory_space<vmem>>, %arg4: memref<128x128xf32, #tpu.memory_space<vmem>>, %arg5: memref<1x128xf32, #tpu.memory_space<vmem>>, %arg6: memref<8x128xf32, #tpu.memory_space<vmem>>, %arg7: memref<8x128xf32, #tpu.memory_space<vmem>>, %arg8: memref<8x1xf32, #tpu.memory_space<vmem>>) attributes {dimension_semantics = [#tpu.dimension_semantics<parallel>, #tpu.dimension_semantics<arbitrary>], iteration_bounds = array<i64: 2, 2>, scalar_prefetch = 0 : i64, scratch_operands = 2 : i64, tpu.core_type = #tpu.core_type<tc>, window_params = [{transform_indices = @transform_0, window_bounds = array<i64: 8, 128>}, {transform_indices = @transform_1, window_bounds = array<i64: 8, 128, 128>}, {pipeline_mode = #tpu.pipeline_mode<synchronous>, transform_indices = @transform_2, window_bounds = array<i64: 128, 128>}, {pipeline_mode = #tpu.pipeline_mode<synchronous>, transform_indices = @transform_3, window_bounds = array<i64: 1, 128>}, {transform_indices = @transform_4, window_bounds = array<i64: 8, 128>}]} {
    %c0_i32 = arith.constant 0 : i32
    %0 = arith.cmpi eq, %arg1, %c0_i32 : i32
    %1 = arith.extui %0 : i1 to i32
    %c0_i32_0 = arith.constant 0 : i32
    %2 = arith.cmpi ne, %1, %c0_i32_0 : i32
    scf.if %2 {
      %cst_16 = arith.constant 0.000000e+00 : f32
      %25 = vector.broadcast %cst_16 : f32 to vector<8x128xf32>
      %c0_17 = arith.constant 0 : index
      %c0_18 = arith.constant 0 : index
      %26 = vector.load %arg7[%c0_17, %c0_18] : memref<8x128xf32, #tpu.memory_space<vmem>>, vector<8x128xf32>
      tpu.vector_store %arg7[%c0_17, %c0_18], %25 {strides = array<i32>} : memref<8x128xf32, #tpu.memory_space<vmem>>, vector<8x128xf32>,
      %cst_19 = arith.constant 0.000000e+00 : f32
      %27 = vector.broadcast %cst_19 : f32 to vector<8x1xf32>
      %c0_20 = arith.constant 0 : index
      %c0_21 = arith.constant 0 : index
      %28 = vector.load %arg8[%c0_20, %c0_21] : memref<8x1xf32, #tpu.memory_space<vmem>>, vector<8x1xf32>
      tpu.vector_store %arg8[%c0_20, %c0_21], %27 {strides = array<i32>} : memref<8x1xf32, #tpu.memory_space<vmem>>, vector<8x1xf32>,
    } else {
    }
    %c0 = arith.constant 0 : index
    %c0_1 = arith.constant 0 : index
    %3 = vector.load %arg2[%c0, %c0_1] : memref<8x128xi32, #tpu.memory_space<vmem>>, vector<8x128xi32>
    %c0_2 = arith.constant 0 : index
    %c0_3 = arith.constant 0 : index
    %c0_4 = arith.constant 0 : index
    %4 = vector.load %arg3[%c0_2, %c0_3, %c0_4] : memref<8x128x128xbf16, #tpu.memory_space<vmem>>, vector<8x128x128xbf16>
    %5 = arith.extf %4 : vector<8x128x128xbf16> to vector<8x128x128xf32>
    %c0_i32_5 = arith.constant 0 : i32
    %6 = vector.broadcast %c0_i32_5 : i32 to vector<8x128xi32>
    %7 = arith.cmpi ne, %3, %6 : vector<8x128xi32>
    %8 = arith.extui %7 : vector<8x128xi1> to vector<8x128xi32>
    %9 = arith.sitofp %8 : vector<8x128xi32> to vector<8x128xf32>
    %c0_6 = arith.constant 0 : index
    %c0_7 = arith.constant 0 : index
    %10 = vector.load %arg7[%c0_6, %c0_7] : memref<8x128xf32, #tpu.memory_space<vmem>>, vector<8x128xf32>
    %11 = vector.shape_cast %9 : vector<8x128xf32> to vector<8x128x1xf32>
    %12 = vector.broadcast %11 : vector<8x128x1xf32> to vector<8x128x128xf32>
    %13 = arith.mulf %5, %12 : vector<8x128x128xf32>
    %cst = arith.constant dense<0.000000e+00> : vector<8x128xf32>
    %14 = vector.multi_reduction <add>, %13, %cst [1] : vector<8x128x128xf32> to vector<8x128xf32>
    %15 = arith.addf %10, %14 : vector<8x128xf32>
    %c0_8 = arith.constant 0 : index
    %c0_9 = arith.constant 0 : index
    %16 = vector.load %arg7[%c0_8, %c0_9] : memref<8x128xf32, #tpu.memory_space<vmem>>, vector<8x128xf32>
    tpu.vector_store %arg7[%c0_8, %c0_9], %15 {strides = array<i32>} : memref<8x128xf32, #tpu.memory_space<vmem>>, vector<8x128xf32>,
    %c0_10 = arith.constant 0 : index
    %c0_11 = arith.constant 0 : index
    %17 = vector.load %arg8[%c0_10, %c0_11] : memref<8x1xf32, #tpu.memory_space<vmem>>, vector<8x1xf32>
    %cst_12 = arith.constant dense<0.000000e+00> : vector<8xf32>
    %18 = vector.multi_reduction <add>, %9, %cst_12 [1] : vector<8x128xf32> to vector<8xf32>
    %19 = vector.shape_cast %18 : vector<8xf32> to vector<8x1xf32>
    %20 = arith.addf %17, %19 : vector<8x1xf32>
    %c0_13 = arith.constant 0 : index
    %c0_14 = arith.constant 0 : index
    %21 = vector.load %arg8[%c0_13, %c0_14] : memref<8x1xf32, #tpu.memory_space<vmem>>, vector<8x1xf32>
    tpu.vector_store %arg8[%c0_13, %c0_14], %20 {strides = array<i32>} : memref<8x1xf32, #tpu.memory_space<vmem>>, vector<8x1xf32>,
    %c1_i32 = arith.constant 1 : i32
    %22 = arith.cmpi eq, %arg1, %c1_i32 : i32
    %23 = arith.extui %22 : i1 to i32
    %c0_i32_15 = arith.constant 0 : i32
    %24 = arith.cmpi ne, %23, %c0_i32_15 : i32
    scf.if %24 {
      %c0_16 = arith.constant 0 : index
      %c0_17 = arith.constant 0 : index
      %25 = vector.load %arg8[%c0_16, %c0_17] : memref<8x1xf32, #tpu.memory_space<vmem>>, vector<8x1xf32>
      %cst_18 = arith.constant 1.000000e-10 : f32
      %26 = vector.broadcast %cst_18 : f32 to vector<8x1xf32>
      %27 = arith.addf %25, %26 : vector<8x1xf32>
      %28 = tpu.reciprocal %27 : vector<8x1xf32> -> vector<8x1xf32>
      %c0_19 = arith.constant 0 : index
      %c0_20 = arith.constant 0 : index
      %29 = vector.load %arg7[%c0_19, %c0_20] : memref<8x128xf32, #tpu.memory_space<vmem>>, vector<8x128xf32>
      %30 = vector.broadcast %28 : vector<8x1xf32> to vector<8x128xf32>
      %31 = arith.mulf %29, %30 : vector<8x128xf32>
      %c0_21 = arith.constant 0 : index
      %c0_22 = arith.constant 0 : index
      %32 = vector.load %arg4[%c0_21, %c0_22] : memref<128x128xf32, #tpu.memory_space<vmem>>, vector<128x128xf32>
      %cst_23 = arith.constant dense<0.000000e+00> : vector<8x128xf32>
      %33 = tpu.matmul %31, %32, %cst_23 {dimension_numbers = #tpu.dot_dimension_numbers<[1], [0], [0], [1], [0, 0, 1, 1], [], []>} : vector<8x128xf32>, vector<128x128xf32>, vector<8x128xf32> -> vector<8x128xf32>
      %c0_24 = arith.constant 0 : index
      %c0_25 = arith.constant 0 : index
      %34 = vector.load %arg5[%c0_24, %c0_25] : memref<1x128xf32, #tpu.memory_space<vmem>>, vector<1x128xf32>
      %35 = vector.broadcast %34 : vector<1x128xf32> to vector<8x128xf32>
      %36 = arith.addf %33, %35 : vector<8x128xf32>
      %37 = tpu.iota {dimensions = array<i32: 1>} : vector<8x128xi32>
      %c5_i32 = arith.constant 5 : i32
      %38 = vector.broadcast %c5_i32 : i32 to vector<8x128xi32>
      %39 = arith.cmpi slt, %37, %38 : vector<8x128xi32>
      %cst_26 = arith.constant 0xFF800000 : f32
      %40 = vector.broadcast %cst_26 : f32 to vector<8x128xf32>
      %41 = arith.select %39, %36, %40 : vector<8x128xi1>, vector<8x128xf32>
      %cst_27 = arith.constant dense<0xFF800000> : vector<8xf32>
      %42 = vector.multi_reduction <maximumf>, %41, %cst_27 [1] : vector<8x128xf32> to vector<8xf32>
      %43 = vector.shape_cast %42 : vector<8xf32> to vector<8x1xf32>
      %44 = vector.broadcast %43 : vector<8x1xf32> to vector<8x128xf32>
      %45 = arith.subf %41, %44 : vector<8x128xf32>
      %46 = math.exp %45 : vector<8x128xf32>
      %cst_28 = arith.constant 0.000000e+00 : f32
      %47 = vector.broadcast %cst_28 : f32 to vector<8x128xf32>
      %48 = arith.select %39, %46, %47 : vector<8x128xi1>, vector<8x128xf32>
      %cst_29 = arith.constant dense<0.000000e+00> : vector<8xf32>
      %49 = vector.multi_reduction <add>, %48, %cst_29 [1] : vector<8x128xf32> to vector<8xf32>
      %50 = vector.shape_cast %49 : vector<8xf32> to vector<8x1xf32>
      %51 = math.log %50 : vector<8x1xf32>
      %52 = vector.broadcast %51 : vector<8x1xf32> to vector<8x128xf32>
      %53 = arith.subf %45, %52 : vector<8x128xf32>
      %c0_30 = arith.constant 0 : index
      %c0_31 = arith.constant 0 : index
      %54 = vector.load %arg6[%c0_30, %c0_31] : memref<8x128xf32, #tpu.memory_space<vmem>>, vector<8x128xf32>
      tpu.vector_store %arg6[%c0_30, %c0_31], %53 {strides = array<i32>} : memref<8x128xf32, #tpu.memory_space<vmem>>, vector<8x128xf32>,
    } else {
    }
    return
  }
  func.func @transform_0(%arg0: i32, %arg1: i32) -> (i32, i32) {
    %c0_i32 = arith.constant 0 : i32
    return %arg0, %arg1 : i32, i32
  }
  func.func @transform_1(%arg0: i32, %arg1: i32) -> (i32, i32, i32) {
    %c0_i32 = arith.constant 0 : i32
    %c0_i32_0 = arith.constant 0 : i32
    return %arg0, %arg1, %c0_i32 : i32, i32, i32
  }
  func.func @transform_2(%arg0: i32, %arg1: i32) -> (i32, i32) {
    %c0_i32 = arith.constant 0 : i32
    %c0_i32_0 = arith.constant 0 : i32
    %c0_i32_1 = arith.constant 0 : i32
    return %c0_i32, %c0_i32_0 : i32, i32
  }
  func.func @transform_3(%arg0: i32, %arg1: i32) -> (i32, i32) {
    %c0_i32 = arith.constant 0 : i32
    %c0_i32_0 = arith.constant 0 : i32
    %c0_i32_1 = arith.constant 0 : i32
    return %c0_i32, %c0_i32_0 : i32, i32
  }
  func.func @transform_4(%arg0: i32, %arg1: i32) -> (i32, i32) {
    %c0_i32 = arith.constant 0 : i32
    %c0_i32_0 = arith.constant 0 : i32
    return %arg0, %c0_i32 : i32, i32
  }
}

</mosaic_0001>

<bundles_post_ra>
// kernel: tpu_custom_call.1
= control target key start
LH: loop header
LB: loop body
LE: loop exit
PB: predicated region body
PF: predicated region fallthrough
CT: control target
= control target key end

     0   :  { %s3225_s0 = inlined_call_operand.hbm [shape: s32[16,256], index: 0, kind: input, shape index: {}]   ;;  %s3226_s1 = inlined_call_operand.hbm [shape: bf16[16,256,128], index: 1, kind: input, shape index: {}]   ;;  %s3227_s2 = inlined_call_operand.hbm [shape: f32[128,128], index: 2, kind: input, shape index: {}]   ;;  %s3228_s3 = inlined_call_operand.hbm [shape: f32[1,128], index: 3, kind: input, shape index: {}]   ;;  %s3229_s4 = inlined_call_operand.hbm [shape: f32[16,128], index: 4, kind: output, shape index: {}]  }
   0x1   :  { %3242 = sst [smem:[#allocation29_spill]] %s3229_s4 }
   0x2   :  { %9 = vsyncpa [#allocation5], 0 }
   0x3   :  { %11 = vsyncpa [#allocation5 + $0x1], 0 }
   0x4   :  { %12 = vsyncpa [#allocation8], 0 }
   0x5   :  { %14 = vsyncpa [#allocation8 + $0x1], 0 }
   0x6   :  { %15 = vsyncpa [#allocation11], 0 }
   0x7   :  { %16 = vsyncpa [#allocation6], 0 }
   0x8   :  { %18 = vsyncpa [#allocation6 + $0x1], 0  ;;  %s2561_s15 = smov 0   ;;  %s2563_s16 = smov 0  }
   0x9   :  { %s2565_s17 = smov 0   ;;  %s2567_s18 = smov 0  }
   0xa   :  { %s2569_s19 = smov 0   ;;  %s2571_s20 = smov 0  }
   0xb   :  { %s2573_s21 = smov 0   ;;  %s2575_s22 = smov 0  }
   0xc   :  { %s2577_s23 = smov 0   ;;  %s2579_s24 = smov 0  }
   0xd   :  { %s2581_s25 = smov 0  }
   0xe LB: > { %3243 = sst [smem:[#allocation21_spill]] %s2476_s15  ;;  %s2615_s26 = sadd.s32 4294967295, %s2516_s25   ;;  %s2516_s25 = sphi %s2581_s25, %s24_s25   ;;  %s2512_s24 = sphi %s2579_s24, %s3285_s24   ;;  %s2508_s23 = sphi %s2577_s23, %s3284_s23   ;;  %s2504_s22 = sphi %s2575_s22, %s3283_s22   ;;  %s2500_s21 = sphi %s2573_s21, %s3282_s21   ;;  %s2496_s20 = sphi %s2571_s20, %s3281_s20   ;;  %s2492_s19 = sphi %s2569_s19, %s3280_s19   ;;  %s2488_s18 = sphi %s2567_s18, %s3279_s18   ;;  %s2484_s17 = sphi %s2565_s17, %s3273_s17   ;;  %s2480_s16 = sphi %s2563_s16, %s3278_s16   ;;  %s2476_s15 = sphi %s2561_s15, %s3277_s15  }
   0xf   : > { %3244 = sst [smem:[#allocation22_spill]] %s2484_s17  ;;  %s1725_s27 = sadd.s32 4294967294, %s2516_s25  }
  0x10   : > { %s33_s28 = sadd.s32 1, %s2508_s23  ;;  %s36_s29 = sadd.s32 1, %s2512_s24 }
  0x11   : > { %p34_p0 = scmp.ge.s32.totalorder %s33_s28, 2  ;;  %s45_s30 = sadd.s32 1, %s2496_s20 }
  0x12   : > { %p52_p1 = scmp.ne.s32.totalorder %s2496_s20, %s2492_s19  ;;  %p53_p2 = scmp.eq.s32.totalorder %s2516_s25, 0 }
  0x13   : > { %s3287_s28 = smov (%p34_p0, %s33_s28), 0  ;;  %s3289_s29 = smov (!%p34_p0, %s36_s29), %s2512_s24 }
  0x14   : > { %3245 = sst [smem:[#allocation23_spill]] %s3287_s28  ;;  %s41_s5 = ssub.s32 %s2508_s23, %s3287_s28 }
  0x15   : > { %p2629_p3 = por %p53_p2, %p52_p1  ;;  %p38_p4 = scmp.ge.s32.totalorder %s3289_s29, 2 }
  0x16   : > { %p58_p5 = scmp.ne.s32.totalorder %s2492_s19, %s2488_s18  ;;  %p3233_p6 = scmp.eq.s32.totalorder %s2615_s26, 0 }
  0x17   : > { %s3246_s6 = scalar_select %p2629_p3, 1, 0 }
  0x18   : > { %s141_s7 = sadd.s32 1, %s2484_s17  ;;  %s3291_s29 = smov (%p38_p4, %s3289_s29), 0 }
  0x19   : > { %3247 = sst [smem:[#allocation24_spill]] %s3291_s29  ;;  %p2640_p7 = por %p3233_p6, %p58_p5 }
  0x1a   : > { %p151_p8 = scmp.ne.s32.totalorder %s2484_s17, %s2480_s16  ;;  %s40_s9 = ssub.s32 %s2512_s24, %s3291_s29 }
  0x1b   : > { %s3248_s8 = scalar_select %p2640_p7, 1, 0 }
  0x1c   : > { %p152_p9 = scmp.eq.s32.totalorder %s2615_s26, 3  ;;  %s42_s10 = sor.u32 %s41_s5, %s40_s9 }
  0x1d   : > { %p139_p10 = scmp.eq.s32.totalorder %s40_s9, 0  ;;  %p43_p11 = scmp.eq.s32.totalorder %s42_s10, 0 }
  0x1e   : > { %p2649_p12 = por %p152_p9, %p151_p8  ;;  %p157_p13 = scmp.ne.s32.totalorder %s2480_s16, %s2476_s15 }
  0x1f   : > { %s2654_s12 = scalar_select %p139_p10, %s2484_s17, %s141_s7  }
  0x20   : > { %s3249_s11 = scalar_select %p2649_p12, 1, 0 }
  0x21   : > { %3250 = sst [smem:[#allocation25_spill]] %s2654_s12  ;;  %p158_p0 = scmp.eq.s32.totalorder %s1725_s27, 3 }
  0x22   : > { %s2657_s13 = scalar_select %p43_p11, %s2496_s20, %s45_s30  }
  0x23   : > { %p1726_p1 = scmp.ge.s32.totalorder %s2516_s25, 1  ;;  %p165_p2 = scmp.lt.s32.totalorder %s2516_s25, 5 }
  0x24   : > { %3251 = sst [smem:[#allocation26_spill]] %s2657_s13  ;;  %p2663_p4 = por %p158_p0, %p157_p13 }
  0x25   : > { %p2667_p5 = pnand %p1726_p1, %p165_p2  ;;  %s2518_s5 = smov [#allocation9]  }
  0x26   : > { %s3252_s14 = scalar_select %p2663_p4, 1, 0 }
  0x27   : > { %s3254_s18 = scalar_select %p2667_p5, 1, 0 }
  0x28   : > { %3253 = sst [smem:[#allocation27_spill]] %s3252_s14  ;;  %s177_s9 = sshll.u32 %s2518_s5, 4  ;;  %s178_s9 = int_to_ptr.vmem [resolvable:$true] %s177_s9 }
  0x29   : > { %p2171_p8 = pneg %p2667_p5  ;;  %s2519_s27 = smov [#allocation10]  }
  0x2a   : > { %s191_s7 = sshll.u32 %s2519_s27, 4  ;;  %s2298_s28 = scalar_lea.hbm %s3227_s2, 2048  ;;  %s2679_s7 = int_to_ptr.vmem [resolvable:$true] %s191_s7 }
  0x2b   : > { %p2675_p9 = pnand %p2171_p8, %p3233_p6  ;;  %p2299_p10 = scmp.ne.s32.totalorder %s3227_s2, %s2298_s28 }
  0x2c   : > { %p2305_p1 = scmp.lt.u32.totalorder %s2298_s28, %s3227_s2 }
  0x2d   : > { %p2300_p11 = pneg %p2675_p9 }
  0x2f   : > { %p2301_p13 = pnand %p2300_p11, %p2299_p10 }
  0x31   : > { %p2302_p0 = pneg %p2301_p13 }
  0x33   : > { %p2307_p2 = pnand %p2305_p1, %p2302_p0 }
  0x35   : > { %2310 = shalt.err (!%p2307_p2)
}
  0x36   : > { %s2311_s27 = scalar_lea.vmem %s178_s9, 2048  ;;  %p2319_p12 = scmp.lt.s32.totalorder %s178_s9, %s178_s9 }
  0x37   : > { %p2312_p8 = scmp.ne.s32.totalorder %s178_s9, %s2311_s27  ;;  %p2320_p7 = scmp.lt.s32.totalorder %s2311_s27, %s2311_s27 }
  0x39   : > { %p2314_p6 = pnand %p2312_p8, %p2300_p11  ;;  %p2321_p5 = por %p2320_p7, %p2319_p12 }
  0x3b   : > { %p2315_p4 = pneg %p2314_p6 }
  0x3d   : > { %p2322_p3 = pnand %p2321_p5, %p2315_p4 }
  0x3f   : > { %2325 = shalt.err (!%p2322_p3)
}
  0x40   : > { %s2520_s29 = smov 128   ;;  %s2521_s13 = smov 8  }
  0x41   : > { %2174 = dma.hbm_to_vmem [thread:$0]  (!%p2675_p9), %s3227_s2, 2048, %s178_s9, [#allocation8], %s2520_s29, %s2520_s29, %s2521_s13  }
  0x42   : > { %s2326_s5 = scalar_lea.hbm %s3228_s3, 16 }
  0x43   : > { %p2327_p6 = scmp.ne.s32.totalorder %s3228_s3, %s2326_s5  ;;  %p2333_p12 = scmp.lt.u32.totalorder %s2326_s5, %s3228_s3 }
  0x45   : > { %p2329_p3 = pnand %p2327_p6, %p2300_p11 }
  0x47   : > { %p2330_p7 = pneg %p2329_p3 }
  0x49   : > { %p2335_p4 = pnand %p2333_p12, %p2330_p7 }
  0x4b   : > { %2338 = shalt.err (!%p2335_p4)
}
  0x4c   : > { %s2339_s9 = scalar_lea.vmem %s2679_s7, 16  ;;  %s2346_s15 = scalar_lea.vmem %s2679_s7, 32 }
  0x4d   : > { %p2340_p5 = scmp.ne.s32.totalorder %s2679_s7, %s2339_s9  ;;  %p2347_p0 = scmp.lt.s32.totalorder %s2679_s7, %s2679_s7 }
  0x4e   : > { %p2348_p1 = scmp.lt.s32.totalorder %s2346_s15, %s2339_s9 }
  0x4f   : > { %p2342_p10 = pnand %p2340_p5, %p2300_p11 }
  0x50   : > { %p2349_p2 = por %p2348_p1, %p2347_p0 }
  0x51   : > { %p2343_p13 = pneg %p2342_p10 }
  0x53   : > { %p2350_p8 = pnand %p2349_p2, %p2343_p13 }
  0x55   : > { %2353 = shalt.err (!%p2350_p8)
}
  0x56   : > { %2177 = dma.hbm_to_vmem [thread:$0]  (!%p2675_p9), %s3228_s3, 16, %s2679_s7, [#allocation11]  }
  0x57   : > { %p1729_p6 = scmp.ge.s32.totalorder %s2516_s25, 4 }
  0x58   : > { %s2731_s29 = sand.u32 (!%p1729_p6), 1, %s2496_s20   ;;  %s1731_s13 = sshll.u32 (!%p1729_p6), %s2512_s24, 1 }
  0x59   : > { %198 = sbr.rel (%p1729_p6) target bundleno = 131 (0x83), region = 24  ;;  %s1730_s17 = sshll.u32 (!%p1729_p6), %s2731_s29, 3 }
  0x5a   : > { %s211_s28 = sadd.s32 (!%p1729_p6), %s2508_s23, %s1731_s13  ;;  %s206_s12 = scalar_lea.vmem (!%p1729_p6), [#allocation4], %s1730_s17 }
  0x5b   : > { %s1732_s30 = sshll.u32 (!%p1729_p6), %s211_s28, 7  ;;  %s215_s10 = sshll.u32 (!%p1729_p6), %s206_s12, 4  ;;  %s216_s10 = int_to_ptr.vmem [resolvable:$true] %s215_s10 }
  0x5c   : > { %s2739_s7 = scalar_lea.hbm (!%p1729_p6), %s3225_s0, %s1732_s30  ;;  %s203_s9 = scalar_lea.sflag (!%p1729_p6), [#allocation5], %s2731_s29 }
  0x5d   : > { %s2354_s15 = scalar_lea.hbm (!%p1729_p6), %s2739_s7, 128  ;;  %p3256_p11 = scmp.ne.s32.totalorder (!%p1729_p6), %s3246_s6, 0 }
  0x5e   : > { %p2355_p9 = scmp.ne.s32.totalorder (!%p1729_p6), %s2739_s7, %s2354_s15  ;;  %s2358_s13 = scalar_lea.hbm (!%p1729_p6), %s3225_s0, 512 }
  0x5f   : > { %p2359_p12 = scmp.lt.u32.totalorder (!%p1729_p6), %s2739_s7, %s3225_s0  ;;  %p2360_p4 = scmp.lt.u32.totalorder (!%p1729_p6), %s2358_s13, %s2354_s15 }
  0x60   : > { %p2356_p3 = pnand %p2355_p9, %p3256_p11  ;;  %p2362_p10 = scmp.lt.u32.totalorder %s2354_s15, %s2739_s7 }
  0x61   : > { %p2361_p5 = por %p2360_p4, %p2359_p12 }
  0x62   : > { %p2357_p7 = pneg %p2356_p3 }
  0x63   : > { %p2363_p13 = por %p2362_p10, %p2361_p5 }
  0x65   : > { %p2364_p0 = pnand %p2363_p13, %p2357_p7 }
  0x67   : > { %2367 = shalt.err (!%p2364_p0)
}
  0x68   : > { %s2368_s30 = scalar_lea.vmem %s216_s10, 128  ;;  %s2522_s12 = smov [#allocation4]  }
  0x69   : > { %p2369_p1 = scmp.ne.s32.totalorder %s216_s10, %s2368_s30  ;;  %s2372_s5 = sshll.u32 %s2522_s12, 4  ;;  %s2373_s5 = int_to_ptr.vmem [resolvable:$false] %s2372_s5 }
  0x6a   : > { %s2374_s27 = scalar_lea.vmem %s2373_s5, 256  ;;  %p2375_p6 = scmp.lt.s32.totalorder %s216_s10, %s2373_s5 }
  0x6b   : > { %p2370_p2 = pnand %p2369_p1, %p3256_p11  ;;  %p2376_p9 = scmp.lt.s32.totalorder %s2374_s27, %s2368_s30 }
  0x6d   : > { %p2371_p8 = pneg %p2370_p2  ;;  %p2377_p3 = por %p2376_p9, %p2375_p6 }
  0x6f   : > { %p2378_p4 = pnand %p2377_p3, %p2371_p8 }
  0x71   : > { %2381 = shalt.err (!%p2378_p4)
}
  0x72   : > { %2154 = dma.hbm_to_vmem [thread:$0]  (%p3256_p11), %s2739_s7, 128, %s216_s10, %s203_s9  }
  0x73   : > { %s1733_s15 = sshll.u32 %s2731_s29, 9  ;;  %s222_s4 = sand.u32 1, %s2516_s25  }
  0x74   : > { %s1735_s14 = sshll.u32 %s2508_s23, 4  ;;  %s1754_s13 = sshll.u32 %s2512_s24, 8 }
  0x75   : > { %s233_s17 = sadd.s32 %s1754_s13, %s1735_s14  ;;  %s226_s28 = scalar_lea.vmem [#allocation7], %s1733_s15 }
  0x76   : > { %s248_s30 = sshll.u32 %s226_s28, 4  ;;  %s1737_s12 = sshll.u32 %s233_s17, 6  ;;  %s249_s30 = int_to_ptr.vmem [resolvable:$true] %s248_s30 }
  0x77   : > { %s2155_s10 = scalar_select %p3256_p11, [#allocation0], [#allocation15] }
  0x78   : > { %s2523_s7 = smov 2048   ;;  %s2524_s5 = smov 1024  }
  0x79   : > { %2156 = sst [smem:[#allocation14]] (%p3256_p11), %s2523_s7  ;;  %s2525_s29 = smov 16  }
  0x7a   : > { %s240_s9 = sld [smem:[%s2155_s10]]   ;;  %s2526_s27 = smov 64  }
  0x7b   : > { %2157 = sst [smem:[#allocation14 + $0x1]] (%p3256_p11), %s2524_s5  ;;  %s235_s13 = scalar_lea.hbm %s3226_s1, %s1737_s12 }
  0x7c   : > { %2158 = sst [smem:[#allocation14 + $0x2]] (%p3256_p11), %s2525_s29  ;;  %s2527_s17 = smov 4  }
  0x7d   : > { %2159 = sst [smem:[#allocation14 + $0x3]] (%p3256_p11), %s2526_s27  ;;  %s223_s7 = scalar_lea.sflag [#allocation8], %s222_s4 }
  0x7e   : > { %2160 = sst [smem:[#allocation14 + $0x4]] (%p3256_p11), %s2526_s27  ;;  %s2528_s5 = smov [#allocation13]  }
  0x7f   : > { %2161 = sst [smem:[#allocation14 + $0x5]] (%p3256_p11), %s2527_s17 }
  0x80   : > { %s1738_s28 = sshll.u32 %s240_s9, 26 }
  0x81   : > { %s1739_s10 = sadd.s32 134217728, %s1738_s28 }
  0x82   : > { %2162 = dma.general (%p3256_p11), %s235_s13, 8192, %s249_s30, %s223_s7, %s2528_s5, [#allocation14], %s1739_s10, 0  }
  0x83 PF: > { %p3257_p7 = scmp.ne.s32.totalorder %s3254_s18, 0 }
  0x85   : > { %273 = sbr.rel (%p3257_p7) target bundleno = 1307 (0x51b), region = 36 }
  0x8c   : > { %s275_s29 = sand.u32 1, %s2492_s19   ;;  %p3258_p12 = scmp.ne.s32.totalorder %s3248_s8, 0 }
  0x8d   : > { %s1741_s15 = sshll.u32 %s275_s29, 3  ;;  %s276_s12 = scalar_lea.sflag [#allocation5], %s275_s29 }
  0x8e   : > { %s279_s14 = scalar_lea.vmem [#allocation4], %s1741_s15 }
  0x8f   : > { %2455 = dma.done.wait (%p3258_p12), %s276_s12, 128  }
  0x90   : > { %2457 = vsyncadd (%p3258_p12), %s276_s12, 4294967168  ;;  %s284_s4 = sand.u32 1, %s2615_s26   ;;  %s1742_s6 = sshll.u32 %s275_s29, 9 }
  0x91   : > { %s285_s30 = scalar_lea.sflag [#allocation8], %s284_s4  ;;  %s2790_s9 = scalar_lea.vmem [#allocation7], %s1742_s6 }
  0x92   : > { %2459 = dma.done.wait (%p3258_p12), %s285_s30, 8192  }
  0x93   : > { %2461 = vsyncadd (%p3258_p12), %s285_s30, 4294959104  ;;  %p3259_p11 = scmp.eq.s32.totalorder %s2615_s26, 0 }
  0x95   : > { %2463 = dma.done.wait (%p3259_p11), [#allocation8], 2048   ;;  %p3260_p5 = pmov %p3259_p11 }
  0x97   : > { %2465 = vsyncadd (%p3260_p5), [#allocation8], 4294965248  ;;  %p3261_p10 = pmov %p3260_p5 }
  0x98   : > { %p3262_p13 = pmov %p3260_p5 }
  0x99   : > { %2467 = dma.done.wait (%p3261_p10), [#allocation11], 16  }
  0x9a   : > { %2469 = vsyncadd (%p3262_p13), [#allocation11], 4294967280  ;;  %s323_s18 = sand.u32 1, %s2480_s16   ;;  %p1746_p0 = scmp.ne.s32.totalorder %s2500_s21, 0 }
  0x9b   : > { %s2807_s27 = sshll.u32 %s323_s18, 3  ;;  %vm333_vm0 = vcmask (!%p1746_p0), 7168   ;;  %v2529_v0 = vmov (!%p1746_p0), 0.0  }
  0x9c   : > { %s325_s8 = scalar_lea.vmem [#allocation12], %s2807_s27  ;;  %331 = sbr.rel (%p1746_p0) target bundleno = 163 (0xa3), region = 56  ;;  %332 = vst [vmem:[#allocation2] sm:$0xff] (!%p1746_p0), %v2529_v0  ;;  %334 = vst.msk [vmem:[#allocation3] sm:$0xff] (!%p1746_p0), %vm333_vm0, %v2529_v0 }
  0xa3 PF: > { %v335_v1 = vld [vmem:[%s279_s14] sm:$0xff]  ;;  %v3241_v2 = vlaneseq  ;;  %v2530_v4 = vmov 0.0   ;;  %v1756_v26 = vld [vmem:[%s2790_s9] sm:$0xff]   ;;  %v2011_v30 = vld [vmem:[%s2790_s9 + $0x8] sm:$0xff]   ;;  %vm1436_vm2 = vcmask 1041409   ;;  %vm1438_vm3 = vcmask 1042434  }
  0xa4   : > { %vm592_vm1 = vcmp.ne.s32.totalorder %v335_v1, 0  ;;  %v1758_v27 = vunpack.c.h.bf16 %v1756_v26  ;;  %v1757_v31 = vunpack.c.l.bf16 %v1756_v26  ;;  %v1761_v32 = vunpack.c.l.bf16 %v2011_v30  ;;  %v2018_v37 = vld [vmem:[%s2790_s9 + $0x40] sm:$0xff]   ;;  %v2019_v45 = vld [vmem:[%s2790_s9 + $0x48] sm:$0xff]   ;;  %v2012_v46 = vld [vmem:[%s2790_s9 + $0x10] sm:$0xff]   ;;  %p1748_p1 = scmp.ne.s32.totalorder %s2500_s21, 1 }
  0xa5   : > { %v2812_v3 = vshrl.u32 %v3241_v2, 7  ;;  %v2814_v5 = vsel %vm592_vm1, 1.0, %v2530_v4  ;;  %v1762_v39 = vunpack.c.h.bf16 %v2011_v30  ;;  %v1790_v43 = vunpack.c.h.bf16 %v2018_v37  ;;  %v2020_v55 = vld [vmem:[%s2790_s9 + $0x50] sm:$0xff]   ;;  %v3089_v2 = vld [vmem:[%s2790_s9 + $0x1e0] sm:$0xff]  }
  0xa6   : > { %v1789_v44 = vunpack.c.l.bf16 %v2018_v37  ;;  %v1794_v53 = vunpack.c.h.bf16 %v2019_v45  ;;  %v1793_v54 = vunpack.c.l.bf16 %v2019_v45  ;;  %v1765_v56 = vunpack.c.l.bf16 %v2012_v46 }
  0xa7   : > { %v598_v6 = vsub.s32 0, %v2812_v3  ;;  %v665_v8 = vsub.s32 1, %v2812_v3  ;;  %v732_v10 = vsub.s32 2, %v2812_v3  ;;  %v799_v12 = vsub.s32 3, %v2812_v3 }
  0xa8   : > { %v866_v18 = vsub.s32 4, %v2812_v3  ;;  %v1766_v57 = vunpack.c.h.bf16 %v2012_v46  ;;  %v1797_v61 = vunpack.c.l.bf16 %v2020_v55  ;;  %v1798_v1 = vunpack.c.h.bf16 %v2020_v55  ;;  %v2023_v55 = vld [vmem:[%s2790_s9 + $0x68] sm:$0xff]  }
  0xa9   : > { %v599_v7 = vrot.slane %v2814_v5, %v598_v6  ;;  %v666_v9 = vrot.slane %v2814_v5, %v665_v8  ;;  %v733_v11 = vrot.slane %v2814_v5, %v732_v10  ;;  %v800_v13 = vrot.slane %v2814_v5, %v799_v12  ;;  %v2021_v6 = vld [vmem:[%s2790_s9 + $0x58] sm:$0xff]  }
  0xaa   : > { %v2828_v21 = vrot.slane %v2814_v5, %v866_v18  ;;  %v2013_v8 = vld [vmem:[%s2790_s9 + $0x18] sm:$0xff]   ;;  %v1067_v45 = vsub.s32 7, %v2812_v3  ;;  %vm1440_vm4 = vcmask 1043459   ;;  %vm1442_vm5 = vcmask 1044484  }
  0xab   : > { %609 = vbcast.lane.b32.xlu1 %v599_v7, 272  ;;  %601 = vbcast.lane.b32.xlu0 %v599_v7, 256  ;;  %v1769_v18 = vunpack.c.l.bf16 %v2013_v8  ;;  %vm1444_vm6 = vcmask 1045509   ;;  %vm1446_vm7 = vcmask 1046534   ;;  %vm1448_vm8 = vcmask 1047559  }
  0xac   : > { %vm1457_vm9 = vcmask 7168   ;;  %vm2533_vm10 = vmmov (!%p1748_p1), 0  }
  0xaf   : > { %613 = vbcast.lane.b32.xlu1 %v599_v7, 280  ;;  %605 = vbcast.lane.b32.xlu0 %v599_v7, 264 }
  0xb3   : > { %621 = vbcast.lane.b32.xlu1 %v599_v7, 296  ;;  %617 = vbcast.lane.b32.xlu0 %v599_v7, 288 }
  0xb7   : > { %629 = vbcast.lane.b32.xlu1 %v599_v7, 312  ;;  %625 = vbcast.lane.b32.xlu0 %v599_v7, 304 }
  0xbb   : > { %637 = vbcast.lane.b32.xlu1 %v599_v7, 328  ;;  %633 = vbcast.lane.b32.xlu0 %v599_v7, 320 }
  0xbf   : > { %645 = vbcast.lane.b32.xlu1 %v599_v7, 344  ;;  %641 = vbcast.lane.b32.xlu0 %v599_v7, 336 }
  0xc3   : > { %653 = vbcast.lane.b32.xlu1 %v599_v7, 360  ;;  %649 = vbcast.lane.b32.xlu0 %v599_v7, 352 }
  0xc7   : > { %661 = vbcast.lane.b32.xlu1 %v599_v7, 376  ;;  %657 = vbcast.lane.b32.xlu0 %v599_v7, 368  ;;  %v933_v7 = vsub.s32 5, %v2812_v3 }
  0xc9   : > { %v2877_v26 = vrot.slane %v2814_v5, %v933_v7  ;;  %v1810_v7 = vunpack.c.h.bf16 %v2023_v55 }
  0xcb   : > { %672 = vbcast.lane.b32.xlu1 %v666_v9, 264  ;;  %668 = vbcast.lane.b32.xlu0 %v666_v9, 256 }
  0xcf   : > { %680 = vbcast.lane.b32.xlu1 %v666_v9, 280  ;;  %676 = vbcast.lane.b32.xlu0 %v666_v9, 272 }
  0xd3   : > { %688 = vbcast.lane.b32.xlu1 %v666_v9, 296  ;;  %684 = vbcast.lane.b32.xlu0 %v666_v9, 288 }
  0xd7   : > { %696 = vbcast.lane.b32.xlu1 %v666_v9, 312  ;;  %692 = vbcast.lane.b32.xlu0 %v666_v9, 304 }
  0xdb   : > { %704 = vbcast.lane.b32.xlu1 %v666_v9, 328  ;;  %700 = vbcast.lane.b32.xlu0 %v666_v9, 320 }
  0xdf   : > { %712 = vbcast.lane.b32.xlu1 %v666_v9, 344  ;;  %708 = vbcast.lane.b32.xlu0 %v666_v9, 336 }
  0xe3   : > { %720 = vbcast.lane.b32.xlu1 %v666_v9, 360  ;;  %716 = vbcast.lane.b32.xlu0 %v666_v9, 352 }
  0xe7   : > { %728 = vbcast.lane.b32.xlu1 %v666_v9, 376  ;;  %724 = vbcast.lane.b32.xlu0 %v666_v9, 368 }
  0xeb   : > { %739 = vbcast.lane.b32.xlu1 %v733_v11, 264  ;;  %735 = vbcast.lane.b32.xlu0 %v733_v11, 256 }
  0xef   : > { %747 = vbcast.lane.b32.xlu1 %v733_v11, 280  ;;  %743 = vbcast.lane.b32.xlu0 %v733_v11, 272 }
  0xf3   : > { %755 = vbcast.lane.b32.xlu1 %v733_v11, 296  ;;  %751 = vbcast.lane.b32.xlu0 %v733_v11, 288 }
  0xf7   : > { %763 = vbcast.lane.b32.xlu1 %v733_v11, 312  ;;  %759 = vbcast.lane.b32.xlu0 %v733_v11, 304 }
  0xfb   : > { %771 = vbcast.lane.b32.xlu1 %v733_v11, 328  ;;  %767 = vbcast.lane.b32.xlu0 %v733_v11, 320 }
  0xff   : > { %779 = vbcast.lane.b32.xlu1 %v733_v11, 344  ;;  %775 = vbcast.lane.b32.xlu0 %v733_v11, 336 }
 0x103   : > { %787 = vbcast.lane.b32.xlu1 %v733_v11, 360  ;;  %783 = vbcast.lane.b32.xlu0 %v733_v11, 352 }
 0x107   : > { %795 = vbcast.lane.b32.xlu1 %v733_v11, 376  ;;  %791 = vbcast.lane.b32.xlu0 %v733_v11, 368 }
 0x10b   : > { %806 = vbcast.lane.b32.xlu1 %v800_v13, 264  ;;  %802 = vbcast.lane.b32.xlu0 %v800_v13, 256 }
 0x10f   : > { %814 = vbcast.lane.b32.xlu1 %v800_v13, 280  ;;  %810 = vbcast.lane.b32.xlu0 %v800_v13, 272 }
 0x113   : > { %822 = vbcast.lane.b32.xlu1 %v800_v13, 296  ;;  %818 = vbcast.lane.b32.xlu0 %v800_v13, 288 }
 0x117   : > { %830 = vbcast.lane.b32.xlu1 %v800_v13, 312  ;;  %826 = vbcast.lane.b32.xlu0 %v800_v13, 304 }
 0x11b   : > { %838 = vbcast.lane.b32.xlu1 %v800_v13, 328  ;;  %834 = vbcast.lane.b32.xlu0 %v800_v13, 320 }
 0x11d   : > { %v610_v14 = vpop.permute.xlu1 %609  ;;  %v602_v15 = vpop.permute.xlu0 %601 }
 0x11e   : > { %v1132_v36 = vmul.f32 %v1757_v31, %v602_v15  ;;  %v1134_v38 = vmul.f32 %v1761_v32, %v610_v14  ;;  %v1770_v31 = vunpack.c.h.bf16 %v2013_v8 }
 0x11f   : > { %846 = vbcast.lane.b32.xlu1 %v800_v13, 344  ;;  %842 = vbcast.lane.b32.xlu0 %v800_v13, 336 }
 0x121   : > { %v614_v16 = vpop.permute.xlu1 %613  ;;  %v606_v17 = vpop.permute.xlu0 %605 }
 0x122   : > { %v1133_v33 = vmul.f32 %v1758_v27, %v606_v17  ;;  %v1135_v47 = vmul.f32 %v1762_v39, %v614_v16  ;;  %v1801_v17 = vunpack.c.l.bf16 %v2021_v6  ;;  %v2022_v27 = vld [vmem:[%s2790_s9 + $0x60] sm:$0xff]  }
 0x123   : > { %854 = vbcast.lane.b32.xlu1 %v800_v13, 360  ;;  %850 = vbcast.lane.b32.xlu0 %v800_v13, 352  ;;  %v1805_v39 = vunpack.c.l.bf16 %v2022_v27 }
 0x124   : > { %v1260_v40 = vadd.f32 %v1133_v33, %v1132_v36 }
 0x125   : > { %v2825_v19 = vpop.permute.xlu1 %621  ;;  %v618_v20 = vpop.permute.xlu0 %617 }
 0x126   : > { %v1261_v48 = vadd.f32 %v1260_v40, %v1134_v38  ;;  %v1136_v4 = vmul.f32 %v1765_v56, %v618_v20  ;;  %v1137_v10 = vmul.f32 %v1766_v57, %v2825_v19  ;;  %v1802_v20 = vunpack.c.h.bf16 %v2021_v6 }
 0x127   : > { %862 = vbcast.lane.b32.xlu1 %v800_v13, 376  ;;  %858 = vbcast.lane.b32.xlu0 %v800_v13, 368  ;;  %v1000_v19 = vsub.s32 6, %v2812_v3 }
 0x128   : > { %v1262_v58 = vadd.f32 %v1261_v48, %v1135_v47 }
 0x129   : > { %v2830_v22 = vpop.permute.xlu1 %629  ;;  %v2832_v23 = vpop.permute.xlu0 %625 }
 0x12a   : > { %v1263_v11 = vadd.f32 %v1262_v58, %v1136_v4  ;;  %v1138_v40 = vmul.f32 %v1769_v18, %v2832_v23  ;;  %v1139_v47 = vmul.f32 %v1770_v31, %v2830_v22  ;;  %v1806_v23 = vunpack.c.h.bf16 %v2022_v27  ;;  %v2027_v27 = vld [vmem:[%s2790_s9 + $0x88] sm:$0xff]  }
 0x12b   : > { %873 = vbcast.lane.b32.xlu1 %v2828_v21, 264  ;;  %869 = vbcast.lane.b32.xlu0 %v2828_v21, 256 }
 0x12c   : > { %v1264_v32 = vadd.f32 %v1263_v11, %v1137_v10  ;;  %v2024_v10 = vld [vmem:[%s2790_s9 + $0x70] sm:$0xff]  }
 0x12d   : > { %v2836_v24 = vpop.permute.xlu1 %637  ;;  %v2838_v25 = vpop.permute.xlu0 %633 }
 0x12e   : > { %v1265_v48 = vadd.f32 %v1264_v32, %v1138_v40  ;;  %v1814_v40 = vunpack.c.h.bf16 %v2024_v10 }
 0x12f   : > { %881 = vbcast.lane.b32.xlu1 %v2828_v21, 280  ;;  %877 = vbcast.lane.b32.xlu0 %v2828_v21, 272 }
 0x130   : > { %v1266_v56 = vadd.f32 %v1265_v48, %v1139_v47 }
 0x131   : > { %v2843_v28 = vpop.permute.xlu1 %645  ;;  %v2845_v29 = vpop.permute.xlu0 %641 }
 0x133   : > { %889 = vbcast.lane.b32.xlu1 %v2828_v21, 296  ;;  %885 = vbcast.lane.b32.xlu0 %v2828_v21, 288 }
 0x135   : > { %v2850_v34 = vpop.permute.xlu1 %653  ;;  %v2852_v35 = vpop.permute.xlu0 %649 }
 0x137   : > { %897 = vbcast.lane.b32.xlu1 %v2828_v21, 312  ;;  %893 = vbcast.lane.b32.xlu0 %v2828_v21, 304 }
 0x139   : > { %v2857_v41 = vpop.permute.xlu1 %661  ;;  %v2859_v42 = vpop.permute.xlu0 %657 }
 0x13b   : > { %905 = vbcast.lane.b32.xlu1 %v2828_v21, 328  ;;  %901 = vbcast.lane.b32.xlu0 %v2828_v21, 320 }
 0x13d   : > { %v673_v49 = vpop.permute.xlu1 %672  ;;  %v669_v50 = vpop.permute.xlu0 %668 }
 0x13e   : > { %v1149_v51 = vmul.f32 %v1790_v43, %v673_v49  ;;  %v1148_v52 = vmul.f32 %v1789_v44, %v669_v50  ;;  %v2014_v43 = vld [vmem:[%s2790_s9 + $0x20] sm:$0xff]  }
 0x13f   : > { %913 = vbcast.lane.b32.xlu1 %v2828_v21, 344  ;;  %909 = vbcast.lane.b32.xlu0 %v2828_v21, 336  ;;  %v1774_v3 = vunpack.c.h.bf16 %v2014_v43 }
 0x140   : > { %v1281_v62 = vadd.f32 %v1149_v51, %v1148_v52  ;;  %v1773_v51 = vunpack.c.l.bf16 %v2014_v43 }
 0x141   : > { %v681_v59 = vpop.permute.xlu1 %680  ;;  %v677_v60 = vpop.permute.xlu0 %676 }
 0x142   : > { %v1151_v63 = vmul.f32 %v1794_v53, %v681_v59  ;;  %v1150_v0 = vmul.f32 %v1793_v54, %v677_v60  ;;  %v2893_v54 = vrot.slane %v2814_v5, %v1067_v45  ;;  %v1140_v58 = vmul.f32 %v1773_v51, %v2838_v25  ;;  %v2026_v25 = vld [vmem:[%s2790_s9 + $0x80] sm:$0xff]   ;;  %v2028_v45 = vld [vmem:[%s2790_s9 + $0x90] sm:$0xff]  }
 0x143   : > { %921 = vbcast.lane.b32.xlu1 %v2828_v21, 360  ;;  %917 = vbcast.lane.b32.xlu0 %v2828_v21, 352 }
 0x144   : > { %v1282_v9 = vadd.f32 %v1281_v62, %v1150_v0  ;;  %v2015_v62 = vld [vmem:[%s2790_s9 + $0x28] sm:$0xff]   ;;  %v1267_v0 = vadd.f32 %v1266_v56, %v1140_v58  ;;  %v2017_v58 = vld [vmem:[%s2790_s9 + $0x38] sm:$0xff]  }
 0x145   : > { %v689_v12 = vpop.permute.xlu1 %688  ;;  %v685_v13 = vpop.permute.xlu0 %684  ;;  %v1777_v6 = vunpack.c.l.bf16 %v2015_v62  ;;  %v1778_v11 = vunpack.c.h.bf16 %v2015_v62 }
 0x146   : > { %v1153_v14 = vmul.f32 %v1798_v1, %v689_v12  ;;  %v1283_v15 = vadd.f32 %v1282_v9, %v1151_v63  ;;  %v1152_v16 = vmul.f32 %v1797_v61, %v685_v13  ;;  %v1809_v61 = vunpack.c.l.bf16 %v2023_v55  ;;  %v2029_v55 = vld [vmem:[%s2790_s9 + $0x98] sm:$0xff]  }
 0x147   : > { %929 = vbcast.lane.b32.xlu1 %v2828_v21, 376  ;;  %925 = vbcast.lane.b32.xlu0 %v2828_v21, 368  ;;  %v2886_v21 = vrot.slane %v2814_v5, %v1000_v19  ;;  %v1141_v63 = vmul.f32 %v1774_v3, %v2836_v24  ;;  %v2016_v19 = vld [vmem:[%s2790_s9 + $0x30] sm:$0xff]  }
 0x148   : > { %v1284_v30 = vadd.f32 %v1283_v15, %v1152_v16  ;;  %v1821_v15 = vunpack.c.l.bf16 %v2026_v25  ;;  %v1142_v16 = vmul.f32 %v1777_v6, %v2845_v29  ;;  %v1825_v29 = vunpack.c.l.bf16 %v2027_v27 }
 0x149   : > { %v697_v33 = vpop.permute.xlu1 %696  ;;  %v693_v36 = vpop.permute.xlu0 %692  ;;  %v1268_v12 = vadd.f32 %v1267_v0, %v1141_v63  ;;  %v1833_v0 = vunpack.c.l.bf16 %v2029_v55 }
 0x14a   : > { %v1285_v37 = vadd.f32 %v1284_v30, %v1153_v14  ;;  %v1154_v38 = vmul.f32 %v1801_v17, %v693_v36  ;;  %v1155_v44 = vmul.f32 %v1802_v20, %v697_v33  ;;  %v1822_v14 = vunpack.c.h.bf16 %v2026_v25 }
 0x14b   : > { %940 = vbcast.lane.b32.xlu1 %v2877_v26, 264  ;;  %936 = vbcast.lane.b32.xlu0 %v2877_v26, 256  ;;  %v1813_v20 = vunpack.c.l.bf16 %v2024_v10  ;;  %v1143_v30 = vmul.f32 %v1778_v11, %v2843_v28  ;;  %v1269_v31 = vadd.f32 %v1268_v12, %v1142_v16  ;;  %v1782_v28 = vunpack.c.h.bf16 %v2016_v19  ;;  %v2030_v10 = vld [vmem:[%s2790_s9 + $0xa0] sm:$0xff]  }
 0x14c   : > { %v1286_v46 = vadd.f32 %v1285_v37, %v1154_v38  ;;  %v1826_v38 = vunpack.c.h.bf16 %v2027_v27  ;;  %v1838_v16 = vunpack.c.h.bf16 %v2030_v10  ;;  %v1837_v27 = vunpack.c.l.bf16 %v2030_v10 }
 0x14d   : > { %v705_v49 = vpop.permute.xlu1 %704  ;;  %v701_v50 = vpop.permute.xlu0 %700  ;;  %v1270_v48 = vadd.f32 %v1269_v31, %v1143_v30  ;;  %v2031_v31 = vld [vmem:[%s2790_s9 + $0xa8] sm:$0xff]  }
 0x14e   : > { %v1287_v52 = vadd.f32 %v1286_v46, %v1155_v44  ;;  %v1156_v53 = vmul.f32 %v1805_v39, %v701_v50  ;;  %v1157_v59 = vmul.f32 %v1806_v23, %v705_v49  ;;  %v1781_v39 = vunpack.c.l.bf16 %v2016_v19  ;;  %v2025_v46 = vld [vmem:[%s2790_s9 + $0x78] sm:$0xff]  }
 0x14f   : > { %1003 = vbcast.lane.b32.xlu1 %v2886_v21, 256  ;;  %944 = vbcast.lane.b32.xlu0 %v2877_v26, 272 }
 0x150   : > { %v1288_v60 = vadd.f32 %v1287_v52, %v1156_v53  ;;  %v1830_v52 = vunpack.c.h.bf16 %v2028_v45  ;;  %v1829_v53 = vunpack.c.l.bf16 %v2028_v45  ;;  %v1144_v3 = vmul.f32 %v1781_v39, %v2852_v35 }
 0x151   : > { %v713_v57 = vpop.permute.xlu1 %712  ;;  %v709_v22 = vpop.permute.xlu0 %708  ;;  %v1834_v35 = vunpack.c.h.bf16 %v2029_v55 }
 0x152   : > { %v1289_v8 = vadd.f32 %v1288_v60, %v1157_v59  ;;  %v1158_v9 = vmul.f32 %v1809_v61, %v709_v22  ;;  %v1159_v17 = vmul.f32 %v1810_v7, %v713_v57  ;;  %v1817_v22 = vunpack.c.l.bf16 %v2025_v46 }
 0x153   : > { %1070 = vbcast.lane.b32.xlu1 %v2893_v54, 256  ;;  %1007 = vbcast.lane.b32.xlu0 %v2886_v21, 264  ;;  %v1145_v60 = vmul.f32 %v1782_v28, %v2850_v34  ;;  %v1271_v61 = vadd.f32 %v1270_v48, %v1144_v3  ;;  %v1786_v34 = vunpack.c.h.bf16 %v2017_v58 }
 0x154   : > { %v1290_v18 = vadd.f32 %v1289_v8, %v1158_v9  ;;  %v1818_v8 = vunpack.c.h.bf16 %v2025_v46 }
 0x155   : > { %v721_v1 = vpop.permute.xlu1 %720  ;;  %v717_v4 = vpop.permute.xlu0 %716  ;;  %v1272_v12 = vadd.f32 %v1271_v61, %v1145_v60  ;;  %v2034_v61 = vld [vmem:[%s2790_s9 + $0xc0] sm:$0xff]  }
 0x156   : > { %v1291_v43 = vadd.f32 %v1290_v18, %v1159_v17  ;;  %v1160_v44 = vmul.f32 %v1813_v20, %v717_v4  ;;  %v1161_v56 = vmul.f32 %v1814_v40, %v721_v1  ;;  %v1785_v1 = vunpack.c.l.bf16 %v2017_v58 }
 0x157   : > { %1011 = vbcast.lane.b32.xlu1 %v2886_v21, 272  ;;  %1074 = vbcast.lane.b32.xlu0 %v2893_v54, 264 }
 0x158   : > { %v1292_v57 = vadd.f32 %v1291_v43, %v1160_v44  ;;  %v1146_v19 = vmul.f32 %v1785_v1, %v2859_v42  ;;  %v1841_v42 = vunpack.c.l.bf16 %v2031_v31 }
 0x159   : > { %v2905_v13 = vpop.permute.xlu1 %728  ;;  %v725_v24 = vpop.permute.xlu0 %724 }
 0x15a   : > { %v1293_v9 = vadd.f32 %v1292_v57, %v1161_v56  ;;  %v1162_v25 = vmul.f32 %v1817_v22, %v725_v24  ;;  %v1163_v24 = vmul.f32 %v1818_v8, %v2905_v13  ;;  %v2032_v13 = vld [vmem:[%s2790_s9 + $0xb0] sm:$0xff]  }
 0x15b   : > { %1078 = vbcast.lane.b32.xlu1 %v2893_v54, 272  ;;  %948 = vbcast.lane.b32.xlu0 %v2877_v26, 280 }
 0x15c   : > { %v1294_v30 = vadd.f32 %v1293_v9, %v1162_v25  ;;  %v1853_v9 = vunpack.c.l.bf16 %v2034_v61  ;;  %v2035_v25 = vld [vmem:[%s2790_s9 + $0xc8] sm:$0xff]  }
 0x15d   : > { %v740_v32 = vpop.permute.xlu1 %739  ;;  %v736_v33 = vpop.permute.xlu0 %735 }
 0x15e   : > { %v1165_v36 = vmul.f32 %v1822_v14, %v740_v32  ;;  %v1164_v37 = vmul.f32 %v1821_v15, %v736_v33  ;;  %v1147_v33 = vmul.f32 %v1786_v34, %v2857_v41  ;;  %v1295_v44 = vadd.f32 %v1294_v30, %v1163_v24 }
 0x15f   : > { %952 = vbcast.lane.b32.xlu1 %v2877_v26, 288  ;;  %1015 = vbcast.lane.b32.xlu0 %v2886_v21, 280  ;;  %v1846_v41 = vunpack.c.h.bf16 %v2032_v13 }
 0x160   : > { %v1302_v47 = vadd.f32 %v1165_v36, %v1164_v37  ;;  %v1273_v36 = vadd.f32 %v1272_v12, %v1146_v19 }
 0x161   : > { %v748_v49 = vpop.permute.xlu1 %747  ;;  %v744_v50 = vpop.permute.xlu0 %743 }
 0x162   : > { %v1167_v51 = vmul.f32 %v1826_v38, %v748_v49  ;;  %v1166_v23 = vmul.f32 %v1825_v29, %v744_v50  ;;  %v1842_v29 = vunpack.c.h.bf16 %v2031_v31  ;;  %v1274_v46 = vadd.f32 %v1273_v36, %v1147_v33 }
 0x163   : > { %1019 = vbcast.lane.b32.xlu1 %v2886_v21, 288  ;;  %1082 = vbcast.lane.b32.xlu0 %v2893_v54, 280 }
 0x164   : > { %v1303_v59 = vadd.f32 %v1302_v47, %v1166_v23  ;;  %v1296_v23 = vrot.slane %v1295_v44, 4  ;;  %v1275_v55 = vrot.slane %v1274_v46, 4 }
 0x165   : > { %v756_v62 = vpop.permute.xlu1 %755  ;;  %v752_v63 = vpop.permute.xlu0 %751 }
 0x166   : > { %v1169_v4 = vmul.f32 %v1830_v52, %v756_v62  ;;  %v1304_v6 = vadd.f32 %v1303_v59, %v1167_v51  ;;  %v1168_v7 = vmul.f32 %v1829_v53, %v752_v63  ;;  %v1845_v51 = vunpack.c.l.bf16 %v2032_v13  ;;  %v2033_v52 = vld [vmem:[%s2790_s9 + $0xb8] sm:$0xff]  }
 0x167   : > { %1086 = vbcast.lane.b32.xlu1 %v2893_v54, 288  ;;  %956 = vbcast.lane.b32.xlu0 %v2877_v26, 296  ;;  %v1850_v57 = vunpack.c.h.bf16 %v2033_v52  ;;  %v1849_v60 = vunpack.c.l.bf16 %v2033_v52  ;;  %v1297_v62 = vadd.f32 %v1296_v23, %v1295_v44 }
 0x168   : > { %v1305_v11 = vadd.f32 %v1304_v6, %v1168_v7  ;;  %v1854_v7 = vunpack.c.h.bf16 %v2034_v61 }
 0x169   : > { %v764_v14 = vpop.permute.xlu1 %763  ;;  %v760_v15 = vpop.permute.xlu0 %759  ;;  %v1298_v10 = vrot.slane %v1297_v62, 2 }
 0x16a   : > { %v1171_v17 = vmul.f32 %v1834_v35, %v764_v14  ;;  %v1306_v18 = vadd.f32 %v1305_v11, %v1169_v4  ;;  %v1170_v20 = vmul.f32 %v1833_v0, %v760_v15  ;;  %v1276_v0 = vadd.f32 %v1275_v55, %v1274_v46 }
 0x16b   : > { %960 = vbcast.lane.b32.xlu1 %v2877_v26, 304  ;;  %1023 = vbcast.lane.b32.xlu0 %v2886_v21, 296  ;;  %v1857_v15 = vunpack.c.l.bf16 %v2035_v25  ;;  %v1299_v19 = vadd.f32 %v1298_v10, %v1297_v62  ;;  %v2040_v10 = vld [vmem:[%s2790_s9 + $0xf0] sm:$0xff]  }
 0x16c   : > { %v1307_v32 = vadd.f32 %v1306_v18, %v1170_v20  ;;  %v1277_v34 = vrot.slane %v1276_v0, 2  ;;  %v1858_v20 = vunpack.c.h.bf16 %v2035_v25 }
 0x16d   : > { %v772_v37 = vpop.permute.xlu1 %771  ;;  %v768_v38 = vpop.permute.xlu0 %767 }
 0x16e   : > { %v1173_v39 = vmul.f32 %v1838_v16, %v772_v37  ;;  %v1308_v40 = vadd.f32 %v1307_v32, %v1171_v17  ;;  %v1172_v43 = vmul.f32 %v1837_v27, %v768_v38  ;;  %v2036_v27 = vld [vmem:[%s2790_s9 + $0xd0] sm:$0xff]   ;;  %v1278_v31 = vadd.f32 %v1277_v34, %v1276_v0 }
 0x16f   : > { %1027 = vbcast.lane.b32.xlu1 %v2886_v21, 304  ;;  %1090 = vbcast.lane.b32.xlu0 %v2893_v54, 296  ;;  %v1861_v36 = vunpack.c.l.bf16 %v2036_v27 }
 0x170   : > { %v1309_v45 = vadd.f32 %v1308_v40, %v1172_v43  ;;  %v2037_v40 = vld [vmem:[%s2790_s9 + $0xd8] sm:$0xff]   ;;  %v1300_v43 = vrot.slane %v1299_v19, 1  ;;  %v1279_v13 = vrot.slane %v1278_v31, 1 }
 0x171   : > { %v780_v47 = vpop.permute.xlu1 %779  ;;  %v776_v28 = vpop.permute.xlu0 %775 }
 0x172   : > { %v1175_v48 = vmul.f32 %v1842_v29, %v780_v47  ;;  %v1310_v49 = vadd.f32 %v1309_v45, %v1173_v39  ;;  %v1174_v50 = vmul.f32 %v1841_v42, %v776_v28  ;;  %v1862_v39 = vunpack.c.h.bf16 %v2036_v27 }
 0x173   : > { %1094 = vbcast.lane.b32.xlu1 %v2893_v54, 304  ;;  %964 = vbcast.lane.b32.xlu0 %v2877_v26, 312  ;;  %v1866_v47 = vunpack.c.h.bf16 %v2037_v40  ;;  %v1865_v28 = vunpack.c.l.bf16 %v2037_v40  ;;  %v1301_v23 = vadd.f32 %v1300_v43, %v1299_v19  ;;  %v1280_v55 = vadd.f32 %v1279_v13, %v1278_v31 }
 0x174   : > { %v1311_v53 = vadd.f32 %v1310_v49, %v1174_v50 }
 0x175   : > { %v788_v3 = vpop.permute.xlu1 %787  ;;  %v784_v56 = vpop.permute.xlu0 %783  ;;  %v1437_v62 = vsel %vm1436_vm2, %v1301_v23, %v1280_v55  ;;  %v2044_v23 = vld [vmem:[%s2790_s9 + $0x110] sm:$0xff]  }
 0x176   : > { %v1177_v22 = vmul.f32 %v1846_v41, %v788_v3  ;;  %v1312_v58 = vadd.f32 %v1311_v53, %v1175_v48  ;;  %v1176_v59 = vmul.f32 %v1845_v51, %v784_v56  ;;  %v2038_v51 = vld [vmem:[%s2790_s9 + $0xe0] sm:$0xff]  }
 0x177   : > { %968 = vbcast.lane.b32.xlu1 %v2877_v26, 320  ;;  %1031 = vbcast.lane.b32.xlu0 %v2886_v21, 312 }
 0x178   : > { %v1313_v63 = vadd.f32 %v1312_v58, %v1176_v59 }
 0x179   : > { %v796_v4 = vpop.permute.xlu1 %795  ;;  %v792_v6 = vpop.permute.xlu0 %791 }
 0x17a   : > { %v1179_v35 = vmul.f32 %v1850_v57, %v796_v4  ;;  %v1314_v1 = vadd.f32 %v1313_v63, %v1177_v22  ;;  %v1178_v8 = vmul.f32 %v1849_v60, %v792_v6  ;;  %v1870_v57 = vunpack.c.h.bf16 %v2038_v51  ;;  %v2039_v63 = vld [vmem:[%s2790_s9 + $0xe8] sm:$0xff]  }
 0x17b   : > { %1035 = vbcast.lane.b32.xlu1 %v2886_v21, 320  ;;  %1098 = vbcast.lane.b32.xlu0 %v2893_v54, 312  ;;  %v1869_v22 = vunpack.c.l.bf16 %v2038_v51  ;;  %v1873_v25 = vunpack.c.l.bf16 %v2039_v63 }
 0x17c   : > { %v1315_v11 = vadd.f32 %v1314_v1, %v1178_v8 }
 0x17d   : > { %v807_v12 = vpop.permute.xlu1 %806  ;;  %v803_v14 = vpop.permute.xlu0 %802 }
 0x17e   : > { %v1316_v16 = vadd.f32 %v1315_v11, %v1179_v35  ;;  %v1181_v17 = vmul.f32 %v1854_v7, %v807_v12  ;;  %v1180_v18 = vmul.f32 %v1853_v9, %v803_v14  ;;  %v1874_v35 = vunpack.c.h.bf16 %v2039_v63 }
 0x17f   : > { %1102 = vbcast.lane.b32.xlu1 %v2893_v54, 320  ;;  %972 = vbcast.lane.b32.xlu0 %v2877_v26, 328  ;;  %v1878_v14 = vunpack.c.h.bf16 %v2040_v10 }
 0x180   : > { %v1317_v24 = vrot.slane %v1316_v16, 4  ;;  %v1323_v30 = vadd.f32 %v1181_v17, %v1180_v18  ;;  %v1877_v18 = vunpack.c.l.bf16 %v2040_v10 }
 0x181   : > { %v815_v32 = vpop.permute.xlu1 %814  ;;  %v811_v33 = vpop.permute.xlu0 %810 }
 0x182   : > { %v1318_v37 = vadd.f32 %v1317_v24, %v1316_v16  ;;  %v1183_v38 = vmul.f32 %v1858_v20, %v815_v32  ;;  %v1182_v29 = vmul.f32 %v1857_v15, %v811_v33  ;;  %v2041_v20 = vld [vmem:[%s2790_s9 + $0xf8] sm:$0xff]  }
 0x183   : > { %976 = vbcast.lane.b32.xlu1 %v2877_v26, 336  ;;  %1039 = vbcast.lane.b32.xlu0 %v2886_v21, 328 }
 0x184   : > { %v1319_v42 = vrot.slane %v1318_v37, 2  ;;  %v1324_v44 = vadd.f32 %v1323_v30, %v1182_v29  ;;  %v1882_v30 = vunpack.c.h.bf16 %v2041_v20 }
 0x185   : > { %v823_v45 = vpop.permute.xlu1 %822  ;;  %v819_v46 = vpop.permute.xlu0 %818 }
 0x186   : > { %v1320_v41 = vadd.f32 %v1319_v42, %v1318_v37  ;;  %v1185_v48 = vmul.f32 %v1862_v39, %v823_v45  ;;  %v1325_v49 = vadd.f32 %v1324_v44, %v1183_v38  ;;  %v1184_v50 = vmul.f32 %v1861_v36, %v819_v46  ;;  %v2042_v37 = vld [vmem:[%s2790_s9 + $0x100] sm:$0xff]   ;;  %v2043_v45 = vld [vmem:[%s2790_s9 + $0x108] sm:$0xff]  }
 0x187   : > { %1043 = vbcast.lane.b32.xlu1 %v2886_v21, 336  ;;  %1106 = vbcast.lane.b32.xlu0 %v2893_v54, 328  ;;  %v1881_v36 = vunpack.c.l.bf16 %v2041_v20  ;;  %v1886_v40 = vunpack.c.h.bf16 %v2042_v37  ;;  %v1885_v13 = vunpack.c.l.bf16 %v2042_v37  ;;  %v1890_v51 = vunpack.c.h.bf16 %v2043_v45  ;;  %v2047_v20 = vld [vmem:[%s2790_s9 + $0x128] sm:$0xff]  }
 0x188   : > { %v1321_v52 = vrot.slane %v1320_v41, 1  ;;  %v1326_v53 = vadd.f32 %v1325_v49, %v1184_v50 }
 0x189   : > { %v831_v3 = vpop.permute.xlu1 %830  ;;  %v827_v56 = vpop.permute.xlu0 %826 }
 0x18a   : > { %v1322_v58 = vadd.f32 %v1321_v52, %v1320_v41  ;;  %v1187_v59 = vmul.f32 %v1866_v47, %v831_v3  ;;  %v1327_v60 = vadd.f32 %v1326_v53, %v1185_v48  ;;  %v1186_v61 = vmul.f32 %v1865_v28, %v827_v56 }
 0x18b   : > { %1110 = vbcast.lane.b32.xlu1 %v2893_v54, 336  ;;  %980 = vbcast.lane.b32.xlu0 %v2877_v26, 344  ;;  %v1889_v41 = vunpack.c.l.bf16 %v2043_v45  ;;  %v1893_v56 = vunpack.c.l.bf16 %v2044_v23 }
 0x18c   : > { %v2956_v0 = vsel %vm1438_vm3, %v1322_v58, %v1437_v62  ;;  %v1328_v4 = vadd.f32 %v1327_v60, %v1186_v61  ;;  %v2045_v60 = vld [vmem:[%s2790_s9 + $0x118] sm:$0xff]  }
 0x18d   : > { %v839_v6 = vpop.permute.xlu1 %838  ;;  %v835_v7 = vpop.permute.xlu0 %834 }
 0x18e   : > { %v1189_v1 = vmul.f32 %v1870_v57, %v839_v6  ;;  %v1329_v8 = vadd.f32 %v1328_v4, %v1187_v59  ;;  %v1188_v9 = vmul.f32 %v1869_v22, %v835_v7  ;;  %v1894_v59 = vunpack.c.h.bf16 %v2044_v23 }
 0x18f   : > { %984 = vbcast.lane.b32.xlu1 %v2877_v26, 352  ;;  %1047 = vbcast.lane.b32.xlu0 %v2886_v21, 344  ;;  %v1898_v6 = vunpack.c.h.bf16 %v2045_v60  ;;  %v1897_v7 = vunpack.c.l.bf16 %v2045_v60 }
 0x190   : > { %v1330_v11 = vadd.f32 %v1329_v8, %v1188_v9 }
 0x191   : > { %v847_v34 = vpop.permute.xlu1 %846  ;;  %v843_v12 = vpop.permute.xlu0 %842 }
 0x192   : > { %v1191_v15 = vmul.f32 %v1874_v35, %v847_v34  ;;  %v1331_v16 = vadd.f32 %v1330_v11, %v1189_v1  ;;  %v1190_v17 = vmul.f32 %v1873_v25, %v843_v12  ;;  %v2046_v25 = vld [vmem:[%s2790_s9 + $0x120] sm:$0xff]  }
 0x193   : > { %1051 = vbcast.lane.b32.xlu1 %v2886_v21, 352  ;;  %1114 = vbcast.lane.b32.xlu0 %v2893_v54, 344  ;;  %v1902_v12 = vunpack.c.h.bf16 %v2046_v25 }
 0x194   : > { %v1332_v27 = vadd.f32 %v1331_v16, %v1190_v17 }
 0x195   : > { %v855_v19 = vpop.permute.xlu1 %854  ;;  %v851_v24 = vpop.permute.xlu0 %850 }
 0x196   : > { %v1193_v31 = vmul.f32 %v1878_v14, %v855_v19  ;;  %v1333_v32 = vadd.f32 %v1332_v27, %v1191_v15  ;;  %v1192_v33 = vmul.f32 %v1877_v18, %v851_v24  ;;  %v1901_v14 = vunpack.c.l.bf16 %v2046_v25 }
 0x197   : > { %1118 = vbcast.lane.b32.xlu1 %v2893_v54, 352  ;;  %988 = vbcast.lane.b32.xlu0 %v2877_v26, 360 }
 0x198   : > { %v1334_v38 = vadd.f32 %v1333_v32, %v1192_v33  ;;  %v1905_v33 = vunpack.c.l.bf16 %v2047_v20 }
 0x199   : > { %v863_v29 = vpop.permute.xlu1 %862  ;;  %v859_v39 = vpop.permute.xlu0 %858 }
 0x19a   : > { %v1195_v43 = vmul.f32 %v1882_v30, %v863_v29  ;;  %v1335_v42 = vadd.f32 %v1334_v38, %v1193_v31  ;;  %v1194_v44 = vmul.f32 %v1881_v36, %v859_v39  ;;  %v2048_v36 = vld [vmem:[%s2790_s9 + $0x130] sm:$0xff]  }
 0x19b   : > { %992 = vbcast.lane.b32.xlu1 %v2877_v26, 368  ;;  %1055 = vbcast.lane.b32.xlu0 %v2886_v21, 360  ;;  %v1910_v39 = vunpack.c.h.bf16 %v2048_v36 }
 0x19c   : > { %v1336_v46 = vadd.f32 %v1335_v42, %v1194_v44  ;;  %v1909_v44 = vunpack.c.l.bf16 %v2048_v36  ;;  %v2058_v36 = vld [vmem:[%s2790_s9 + $0x180] sm:$0xff]  }
 0x19d   : > { %v874_v47 = vpop.permute.xlu1 %873  ;;  %v870_v28 = vpop.permute.xlu0 %869 }
 0x19e   : > { %v1337_v48 = vadd.f32 %v1336_v46, %v1195_v43  ;;  %v1197_v49 = vmul.f32 %v1886_v40, %v874_v47  ;;  %v1196_v50 = vmul.f32 %v1885_v13, %v870_v28  ;;  %v2049_v13 = vld [vmem:[%s2790_s9 + $0x138] sm:$0xff]  }
 0x19f   : > { %1059 = vbcast.lane.b32.xlu1 %v2886_v21, 368  ;;  %1122 = vbcast.lane.b32.xlu0 %v2893_v54, 360  ;;  %v1914_v47 = vunpack.c.h.bf16 %v2049_v13 }
 0x1a0   : > { %v1338_v52 = vrot.slane %v1337_v48, 4  ;;  %v1344_v53 = vadd.f32 %v1197_v49, %v1196_v50  ;;  %v1913_v49 = vunpack.c.l.bf16 %v2049_v13 }
 0x1a1   : > { %v882_v55 = vpop.permute.xlu1 %881  ;;  %v878_v3 = vpop.permute.xlu0 %877 }
 0x1a2   : > { %v1339_v57 = vadd.f32 %v1338_v52, %v1337_v48  ;;  %v1199_v22 = vmul.f32 %v1890_v51, %v882_v55  ;;  %v1198_v58 = vmul.f32 %v1889_v41, %v878_v3 }
 0x1a3   : > { %1126 = vbcast.lane.b32.xlu1 %v2893_v54, 368  ;;  %996 = vbcast.lane.b32.xlu0 %v2877_v26, 376 }
 0x1a4   : > { %v1340_v61 = vrot.slane %v1339_v57, 2  ;;  %v1345_v62 = vadd.f32 %v1344_v53, %v1198_v58 }
 0x1a5   : > { %v890_v63 = vpop.permute.xlu1 %889  ;;  %v886_v4 = vpop.permute.xlu0 %885 }
 0x1a6   : > { %v1341_v35 = vadd.f32 %v1340_v61, %v1339_v57  ;;  %v1201_v1 = vmul.f32 %v1894_v59, %v890_v63  ;;  %v1346_v8 = vadd.f32 %v1345_v62, %v1199_v22  ;;  %v1200_v9 = vmul.f32 %v1893_v56, %v886_v4 }
 0x1a7   : > { %1130 = vbcast.lane.b32.xlu1 %v2893_v54, 376  ;;  %1063 = vbcast.lane.b32.xlu0 %v2886_v21, 376  ;;  %v1906_v21 = vunpack.c.h.bf16 %v2047_v20 }
 0x1a8   : > { %v1342_v10 = vrot.slane %v1341_v35, 1  ;;  %v1347_v11 = vadd.f32 %v1346_v8, %v1200_v9 }
 0x1a9   : > { %v898_v26 = vpop.permute.xlu1 %897  ;;  %v894_v34 = vpop.permute.xlu0 %893 }
 0x1aa   : > { %v1343_v15 = vadd.f32 %v1342_v10, %v1341_v35  ;;  %v1203_v16 = vmul.f32 %v1898_v6, %v898_v26  ;;  %v1348_v17 = vadd.f32 %v1347_v11, %v1201_v1  ;;  %v1202_v18 = vmul.f32 %v1897_v7, %v894_v34 }
 0x1ac   : > { %v1441_v27 = vsel %vm1440_vm4, %v1343_v15, %v2956_v0  ;;  %v1349_v19 = vadd.f32 %v1348_v17, %v1202_v18 }
 0x1ad   : > { %v906_v24 = vpop.permute.xlu1 %905  ;;  %v902_v54 = vpop.permute.xlu0 %901 }
 0x1ae   : > { %v1205_v30 = vmul.f32 %v1902_v12, %v906_v24  ;;  %v1350_v31 = vadd.f32 %v1349_v19, %v1203_v16  ;;  %v1204_v32 = vmul.f32 %v1901_v14, %v902_v54 }
 0x1b0   : > { %v1351_v37 = vadd.f32 %v1350_v31, %v1204_v32 }
 0x1b1   : > { %v914_v38 = vpop.permute.xlu1 %913  ;;  %v910_v29 = vpop.permute.xlu0 %909 }
 0x1b2   : > { %v1207_v40 = vmul.f32 %v1906_v21, %v914_v38  ;;  %v1352_v43 = vadd.f32 %v1351_v37, %v1205_v30  ;;  %v1206_v42 = vmul.f32 %v1905_v33, %v910_v29  ;;  %v2050_v30 = vld [vmem:[%s2790_s9 + $0x140] sm:$0xff]   ;;  %v2051_v33 = vld [vmem:[%s2790_s9 + $0x148] sm:$0xff]  }
 0x1b3   : > { %v2066_v37 = vld [vmem:[%s2790_s9 + $0x1c0] sm:$0xff]   ;;  %v2059_v38 = vld [vmem:[%s2790_s9 + $0x188] sm:$0xff]   ;;  %v1918_v29 = vunpack.c.h.bf16 %v2050_v30 }
 0x1b4   : > { %v1353_v0 = vadd.f32 %v1352_v43, %v1206_v42  ;;  %v2052_v43 = vld [vmem:[%s2790_s9 + $0x150] sm:$0xff]   ;;  %v1921_v42 = vunpack.c.l.bf16 %v2051_v33 }
 0x1b5   : > { %v922_v45 = vpop.permute.xlu1 %921  ;;  %v918_v46 = vpop.permute.xlu0 %917 }
 0x1b6   : > { %v1209_v28 = vmul.f32 %v1910_v39, %v922_v45  ;;  %v1354_v41 = vadd.f32 %v1353_v0, %v1207_v40  ;;  %v1208_v48 = vmul.f32 %v1909_v44, %v918_v46  ;;  %v1917_v39 = vunpack.c.l.bf16 %v2050_v30  ;;  %v2067_v40 = vld [vmem:[%s2790_s9 + $0x1c8] sm:$0xff]   ;;  %v3046_v44 = vld [vmem:[%s2790_s9 + $0x190] sm:$0xff]  }
 0x1b7   : > { %v1949_v45 = vunpack.c.l.bf16 %v2058_v36  ;;  %v1981_v46 = vunpack.c.l.bf16 %v2066_v37 }
 0x1b8   : > { %v1355_v50 = vadd.f32 %v1354_v41, %v1208_v48  ;;  %v3053_v41 = vld [vmem:[%s2790_s9 + $0x1d0] sm:$0xff]   ;;  %v3056_v48 = vld [vmem:[%s2790_s9 + $0x158] sm:$0xff]  }
 0x1b9   : > { %v930_v51 = vpop.permute.xlu1 %929  ;;  %v926_v23 = vpop.permute.xlu0 %925 }
 0x1ba   : > { %v1211_v52 = vmul.f32 %v1914_v47, %v930_v51  ;;  %v1356_v53 = vadd.f32 %v1355_v50, %v1209_v28  ;;  %v1210_v55 = vmul.f32 %v1913_v49, %v926_v23  ;;  %v1950_v47 = vunpack.c.h.bf16 %v2058_v36 }
 0x1bb   : > { %v1953_v28 = vunpack.c.l.bf16 %v2059_v38  ;;  %v1982_v49 = vunpack.c.h.bf16 %v2066_v37  ;;  %v1985_v50 = vunpack.c.l.bf16 %v2067_v40  ;;  %v1922_v51 = vunpack.c.h.bf16 %v2051_v33  ;;  %v3076_v37 = vld [vmem:[%s2790_s9 + $0x160] sm:$0xff]  }
 0x1bc   : > { %v1357_v3 = vadd.f32 %v1356_v53, %v1210_v55  ;;  %v1925_v23 = vunpack.c.l.bf16 %v2052_v43  ;;  %v1990_v36 = vunpack.c.h.bf16 %v3053_v41 }
 0x1bd   : > { %v941_v56 = vpop.permute.xlu1 %940  ;;  %v937_v57 = vpop.permute.xlu0 %936 }
 0x1be   : > { %v1358_v22 = vadd.f32 %v1357_v3, %v1211_v52  ;;  %v3059_v52 = vld [vmem:[%s2790_s9 + $0x198] sm:$0xff]   ;;  %v1213_v53 = vmul.f32 %v1918_v29, %v941_v56  ;;  %v1212_v55 = vmul.f32 %v1917_v39, %v937_v57  ;;  %v1954_v3 = vunpack.c.h.bf16 %v2059_v38  ;;  %v3079_v38 = vld [vmem:[%s2790_s9 + $0x1a0] sm:$0xff]  }
 0x1bf   : > { %v1958_v57 = vunpack.c.h.bf16 %v3046_v44  ;;  %v1961_v33 = vunpack.c.l.bf16 %v3059_v52 }
 0x1c0   : > { %v1359_v58 = vrot.slane %v1358_v22, 4 }
 0x1c1   : > { %v2983_v59 = vpop.permute.xlu1 %1003  ;;  %v2985_v60 = vpop.permute.xlu0 %944 }
 0x1c2   : > { %v1360_v61 = vadd.f32 %v1359_v58, %v1358_v22  ;;  %v1957_v22 = vunpack.c.l.bf16 %v3046_v44  ;;  %v3063_v58 = vld [vmem:[%s2790_s9 + $0x1d8] sm:$0xff]   ;;  %v1214_v56 = vmul.f32 %v1921_v42, %v2985_v60  ;;  %v1228_v29 = vmul.f32 %v1949_v45, %v2983_v59 }
 0x1c3   : > { %v1365_v60 = vadd.f32 %v1213_v53, %v1212_v55  ;;  %v1933_v59 = vunpack.c.l.bf16 %v3076_v37  ;;  %v1965_v45 = vunpack.c.l.bf16 %v3079_v38 }
 0x1c4   : > { %v1361_v62 = vrot.slane %v1360_v61, 2 }
 0x1c5   : > { %v2987_v63 = vpop.permute.xlu1 %1070  ;;  %v2989_v4 = vpop.permute.xlu0 %1007 }
 0x1c6   : > { %v1362_v6 = vadd.f32 %v1361_v62, %v1360_v61  ;;  %1454 = vadd.xlane.f32.xlu0 %v2814_v5  ;;  %v1986_v61 = vunpack.c.h.bf16 %v2067_v40  ;;  %v1989_v62 = vunpack.c.l.bf16 %v3053_v41  ;;  %v1229_v39 = vmul.f32 %v1950_v47, %v2989_v4 }
 0x1c7   : > { %v1993_v40 = vunpack.c.l.bf16 %v3063_v58  ;;  %v1244_v42 = vmul.f32 %v1981_v46, %v2987_v63  ;;  %v1962_v4 = vunpack.c.h.bf16 %v3059_v52  ;;  %v1366_v63 = vadd.f32 %v1365_v60, %v1214_v56 }
 0x1c8   : > { %v1363_v7 = vrot.slane %v1362_v6, 1  ;;  %v1994_v46 = vunpack.c.h.bf16 %v3063_v58  ;;  %v1934_v52 = vunpack.c.h.bf16 %v3076_v37 }
 0x1c9   : > { %v2992_v35 = vpop.permute.xlu1 %1011  ;;  %v2994_v1 = vpop.permute.xlu0 %1074 }
 0x1ca   : > { %v1364_v8 = vadd.f32 %v1363_v7, %v1362_v6  ;;  %v1926_v6 = vunpack.c.h.bf16 %v2052_v43  ;;  %v1929_v7 = vunpack.c.l.bf16 %v3056_v48  ;;  %v1930_v43 = vunpack.c.h.bf16 %v3056_v48 }
 0x1cb   : > { %v1245_v44 = vmul.f32 %v1982_v49, %v2994_v1  ;;  %v3103_v49 = vld [vmem:[%s2790_s9 + $0x168] sm:$0xff]  }
 0x1cc   : > { %v2996_v9 = vsel %vm1442_vm5, %v1364_v8, %v1441_v27  ;;  %v1937_v58 = vunpack.c.l.bf16 %v3103_v49 }
 0x1cd   : > { %3263 = vst [vmem:[#allocation28_spill] sm:$0xff] %v2996_v9  ;;  %v2998_v25 = vpop.permute.xlu1 %1078  ;;  %v3000_v10 = vpop.permute.xlu0 %948  ;;  %v1230_v9 = vmul.f32 %v1953_v28, %v2992_v35  ;;  %v1386_v35 = vadd.f32 %v1229_v39, %v1228_v29  ;;  %v1407_v53 = vadd.f32 %v1245_v44, %v1244_v42 }
 0x1ce   : > { %v1215_v41 = vmul.f32 %v1922_v51, %v3000_v10  ;;  %v1246_v1 = vmul.f32 %v1985_v50, %v2998_v25  ;;  %v1997_v51 = vunpack.c.l.bf16 %v3089_v2  ;;  %v3111_v50 = vld [vmem:[%s2790_s9 + $0x1a8] sm:$0xff]  }
 0x1d0   : > { %v1367_v55 = vadd.f32 %v1366_v63, %v1215_v41  ;;  %v1408_v29 = vadd.f32 %v1407_v53, %v1246_v1  ;;  %v2056_v41 = vld [vmem:[%s2790_s9 + $0x170] sm:$0xff]  }
 0x1d1   : > { %v3002_v11 = vpop.permute.xlu1 %952  ;;  %v3004_v26 = vpop.permute.xlu0 %1015  ;;  %v2072_v53 = vld [vmem:[%s2790_s9 + $0x1f0] sm:$0xff]  }
 0x1d2   : > { %v1216_v10 = vmul.f32 %v1925_v23, %v3002_v11  ;;  %v1231_v28 = vmul.f32 %v1954_v3, %v3004_v26  ;;  %v1387_v11 = vadd.f32 %v1386_v35, %v1230_v9  ;;  %v1966_v26 = vunpack.c.h.bf16 %v3079_v38 }
 0x1d4   : > { %v1368_v39 = vadd.f32 %v1367_v55, %v1216_v10  ;;  %v1388_v9 = vadd.f32 %v1387_v11, %v1231_v28  ;;  %v2057_v11 = vld [vmem:[%s2790_s9 + $0x178] sm:$0xff]  }
 0x1d5   : > { %v3006_v34 = vpop.permute.xlu1 %1019  ;;  %v3008_v5 = vpop.permute.xlu0 %1082 }
 0x1d6   : > { %v1247_v56 = vmul.f32 %v1986_v61, %v3008_v5  ;;  %v1232_v23 = vmul.f32 %v1957_v22, %v3006_v34  ;;  %v3123_v61 = vld [vmem:[%s2790_s9 + $0x1e8] sm:$0xff]   ;;  %v1969_v22 = vunpack.c.l.bf16 %v3111_v50 }
 0x1d8   : > { %v1409_v38 = vadd.f32 %v1408_v29, %v1247_v56 }
 0x1d9   : > { %v3010_v12 = vpop.permute.xlu1 %1086  ;;  %v3012_v14 = vpop.permute.xlu0 %956 }
 0x1da   : > { %v1217_v25 = vmul.f32 %v1926_v6, %v3012_v14  ;;  %v1248_v5 = vmul.f32 %v1989_v62, %v3010_v12  ;;  %v1998_v6 = vunpack.c.h.bf16 %v3089_v2  ;;  %v1389_v12 = vadd.f32 %v1388_v9, %v1232_v23 }
 0x1db   : > { %v2001_v62 = vunpack.c.l.bf16 %v3123_v61 }
 0x1dc   : > { %v1369_v60 = vadd.f32 %v1368_v39, %v1217_v25  ;;  %v1410_v63 = vadd.f32 %v1409_v38, %v1248_v5  ;;  %v2065_v39 = vld [vmem:[%s2790_s9 + $0x1b8] sm:$0xff]  }
 0x1dd   : > { %v3014_v15 = vpop.permute.xlu1 %960  ;;  %v3016_v16 = vpop.permute.xlu0 %1023 }
 0x1de   : > { %v1218_v14 = vmul.f32 %v1929_v7, %v3014_v15  ;;  %v1233_v34 = vmul.f32 %v1958_v57, %v3016_v16  ;;  %v1938_v7 = vunpack.c.h.bf16 %v3103_v49 }
 0x1e0   : > { %v1370_v2 = vadd.f32 %v1369_v60, %v1218_v14 }
 0x1e1   : > { %v3018_v17 = vpop.permute.xlu1 %1027  ;;  %v3020_v18 = vpop.permute.xlu0 %1090 }
 0x1e2   : > { %v1249_v42 = vmul.f32 %v1990_v36, %v3020_v18  ;;  %v1234_v15 = vmul.f32 %v1961_v33, %v3018_v17  ;;  %v2064_v18 = vld [vmem:[%s2790_s9 + $0x1b0] sm:$0xff]   ;;  %v1390_v36 = vadd.f32 %v1389_v12, %v1233_v34  ;;  %v1970_v17 = vunpack.c.h.bf16 %v3111_v50  ;;  %v2073_v34 = vld [vmem:[%s2790_s9 + $0x1f8] sm:$0xff]  }
 0x1e4   : > { %v1411_v33 = vadd.f32 %v1410_v63, %v1249_v42  ;;  %v1391_v55 = vadd.f32 %v1390_v36, %v1234_v15  ;;  %v1946_v63 = vunpack.c.h.bf16 %v2057_v11 }
 0x1e5   : > { %v3022_v20 = vpop.permute.xlu1 %1094  ;;  %v3024_v27 = vpop.permute.xlu0 %964 }
 0x1e6   : > { %v1219_v44 = vmul.f32 %v1930_v43, %v3024_v27  ;;  %v1250_v1 = vmul.f32 %v1993_v40, %v3022_v20  ;;  %v1941_v43 = vunpack.c.l.bf16 %v2056_v41  ;;  %v1973_v40 = vunpack.c.l.bf16 %v2064_v18 }
 0x1e8   : > { %v1371_v35 = vadd.f32 %v1370_v2, %v1219_v44 }
 0x1e9   : > { %v3026_v19 = vpop.permute.xlu1 %968  ;;  %v3028_v24 = vpop.permute.xlu0 %1031 }
 0x1ea   : > { %v1220_v10 = vmul.f32 %v1933_v59, %v3026_v19  ;;  %v1235_v27 = vmul.f32 %v1962_v4, %v3028_v24  ;;  %v2002_v19 = vunpack.c.h.bf16 %v3123_v61  ;;  %v1412_v4 = vadd.f32 %v1411_v33, %v1250_v1 }
 0x1eb   : > { %v2010_v33 = vunpack.c.h.bf16 %v2073_v34 }
 0x1ec   : > { %v1372_v56 = vadd.f32 %v1371_v35, %v1220_v10  ;;  %v1978_v35 = vunpack.c.h.bf16 %v2065_v39 }
 0x1ed   : > { %v3030_v54 = vpop.permute.xlu1 %1035  ;;  %v3032_v21 = vpop.permute.xlu0 %1098 }
 0x1ee   : > { %v1251_v49 = vmul.f32 %v1994_v46, %v3032_v21  ;;  %v1236_v20 = vmul.f32 %v1965_v45, %v3030_v54  ;;  %v1392_v21 = vadd.f32 %v1391_v55, %v1235_v27  ;;  %v2005_v46 = vunpack.c.l.bf16 %v2072_v53 }
 0x1f0   : > { %v1413_v54 = vadd.f32 %v1412_v4, %v1251_v49  ;;  %v1393_v5 = vadd.f32 %v1392_v21, %v1236_v20 }
 0x1f1   : > { %v3035_v31 = vpop.permute.xlu1 %1102  ;;  %v3037_v32 = vpop.permute.xlu0 %972 }
 0x1f2   : > { %v1221_v28 = vmul.f32 %v1934_v52, %v3037_v32  ;;  %v1252_v25 = vmul.f32 %v1997_v51, %v3035_v31  ;;  %v1942_v52 = vunpack.c.h.bf16 %v2056_v41  ;;  %v1945_v31 = vunpack.c.l.bf16 %v2057_v11 }
 0x1f4   : > { %v1373_v45 = vadd.f32 %v1372_v56, %v1221_v28  ;;  %v1414_v61 = vadd.f32 %v1413_v54, %v1252_v25 }
 0x1f5   : > { %v3048_v13 = vpop.permute.xlu1 %976  ;;  %v3050_v0 = vpop.permute.xlu0 %1039 }
 0x1f6   : > { %v1222_v50 = vmul.f32 %v1937_v58, %v3048_v13  ;;  %v1237_v32 = vmul.f32 %v1966_v26, %v3050_v0  ;;  %v1974_v13 = vunpack.c.h.bf16 %v2064_v18 }
 0x1f8   : > { %v1374_v9 = vadd.f32 %v1373_v45, %v1222_v50  ;;  %v1394_v38 = vadd.f32 %v1393_v5, %v1237_v32 }
 0x1f9   : > { %v3067_v8 = vpop.permute.xlu1 %1043  ;;  %v3069_v30 = vpop.permute.xlu0 %1106 }
 0x1fa   : > { %v1253_v23 = vmul.f32 %v1998_v6, %v3069_v30  ;;  %v1238_v14 = vmul.f32 %v1969_v22, %v3067_v8  ;;  %v1977_v6 = vunpack.c.l.bf16 %v2065_v39 }
 0x1fc   : > { %v1415_v60 = vadd.f32 %v1414_v61, %v1253_v23  ;;  %v1395_v22 = vadd.f32 %v1394_v38, %v1238_v14  ;;  %v595_v38 = vld [vmem:[#allocation2] sm:$0xff] }
 0x1fd   : > { %v3095_v47 = vpop.permute.xlu1 %1110  ;;  %v3097_v48 = vpop.permute.xlu0 %980 }
 0x1fe   : > { %v1223_v29 = vmul.f32 %v1938_v7, %v3097_v48  ;;  %v1254_v0 = vmul.f32 %v2001_v62, %v3095_v47  ;;  %v2006_v48 = vunpack.c.h.bf16 %v2072_v53  ;;  %v2009_v7 = vunpack.c.l.bf16 %v2073_v34 }
 0x200   : > { %v1375_v42 = vadd.f32 %v1374_v9, %v1223_v29  ;;  %v1416_v2 = vadd.f32 %v1415_v60, %v1254_v0  ;;  %v1453_v60 = vld [vmem:[#allocation3] sm:$0xff] }
 0x201   : > { %v3116_v3 = vpop.permute.xlu1 %984  ;;  %v3118_v37 = vpop.permute.xlu0 %1047 }
 0x202   : > { %v1224_v26 = vmul.f32 %v1941_v43, %v3116_v3  ;;  %v1239_v30 = vmul.f32 %v1970_v17, %v3118_v37 }
 0x204   : > { %v1376_v47 = vadd.f32 %v1375_v42, %v1224_v26  ;;  %v1396_v1 = vadd.f32 %v1395_v22, %v1239_v30  ;;  %v3264_v26 = vld [vmem:[#allocation28_spill] sm:$0xff]  ;;  %v1473_v22 = vld [vmem:[#allocation9] sm:$0xff] (!%p1748_p1) }
 0x205   : > { %v1052_v16 = vpop.permute.xlu1 %1051  ;;  %v1115_v57 = vpop.permute.xlu0 %1114 }
 0x206   : > { %v1255_v44 = vmul.f32 %v2002_v19, %v1115_v57  ;;  %v1240_v41 = vmul.f32 %v1973_v40, %v1052_v16 }
 0x208   : > { %v1417_v18 = vadd.f32 %v1416_v2, %v1255_v44  ;;  %v1397_v27 = vadd.f32 %v1396_v1, %v1240_v41  ;;  %v1474_v41 = vld [vmem:[#allocation9 + $0x8] sm:$0xff] (!%p1748_p1)  ;;  %v1475_v2 = vld [vmem:[#allocation9 + $0x10] sm:$0xff] (!%p1748_p1) }
 0x209   : > { %v1119_v59 = vpop.permute.xlu1 %1118  ;;  %v989_v24 = vpop.permute.xlu0 %988  ;;  %v1478_v1 = vld [vmem:[#allocation9 + $0x28] sm:$0xff] (!%p1748_p1) }
 0x20a   : > { %v1225_v8 = vmul.f32 %v1942_v52, %v989_v24  ;;  %v1256_v62 = vmul.f32 %v2005_v46, %v1119_v59 }
 0x20c   : > { %v1377_v37 = vadd.f32 %v1376_v47, %v1225_v8  ;;  %v1418_v16 = vadd.f32 %v1417_v18, %v1256_v62  ;;  %v1476_v47 = vld [vmem:[#allocation9 + $0x18] sm:$0xff] (!%p1748_p1)  ;;  %v1479_v18 = vld [vmem:[#allocation9 + $0x30] sm:$0xff] (!%p1748_p1) }
 0x20d   : > { %v993_v51 = vpop.permute.xlu1 %992  ;;  %v1056_v58 = vpop.permute.xlu0 %1055  ;;  %v2130_v62 = vpack.c.bf16 (!%p1748_p1), %v1476_v47, %v1475_v2 }
 0x20e   : > { %v1226_v3 = vmul.f32 %v1945_v31, %v993_v51  ;;  %v1241_v10 = vmul.f32 %v1974_v13, %v1056_v58 }
 0x210   : > { %v1378_v49 = vadd.f32 %v1377_v37, %v1226_v3  ;;  %v1398_v55 = vadd.f32 %v1397_v27, %v1241_v10  ;;  %v1477_v3 = vld [vmem:[#allocation9 + $0x20] sm:$0xff] (!%p1748_p1)  ;;  %v1480_v37 = vld [vmem:[#allocation9 + $0x38] sm:$0xff] (!%p1748_p1) }
 0x211   : > { %v1060_v12 = vpop.permute.xlu1 %1059  ;;  %v1123_v15 = vpop.permute.xlu0 %1122  ;;  %v2133_v10 = vpack.c.bf16 (!%p1748_p1), %v1478_v1, %v1477_v3  ;;  %v1481_v27 = vld [vmem:[#allocation9 + $0x40] sm:$0xff] (!%p1748_p1) }
 0x212   : > { %v1257_v36 = vmul.f32 %v2006_v48, %v1123_v15  ;;  %v1242_v43 = vmul.f32 %v1977_v6, %v1060_v12  ;;  %v2531_v12 = vmov (!%p1748_p1), 0  }
 0x213   : > { %2291 = vset.pattern.permute.xlu0 (!%p1748_p1), %v2531_v12 }
 0x214   : > { %v1419_v20 = vadd.f32 %v1418_v16, %v1257_v36  ;;  %v1399_v19 = vadd.f32 %v1398_v55, %v1242_v43  ;;  %v2136_v36 = vpack.c.bf16 (!%p1748_p1), %v1480_v37, %v1479_v18  ;;  %v1482_v43 = vld [vmem:[#allocation9 + $0x48] sm:$0xff] (!%p1748_p1)  ;;  %v1484_v16 = vld [vmem:[#allocation9 + $0x58] sm:$0xff] (!%p1748_p1) }
 0x215   : > { %v1127_v17 = vpop.permute.xlu1 %1126  ;;  %v997_v57 = vpop.permute.xlu0 %996 }
 0x216   : > { %v1258_v28 = vmul.f32 %v2009_v7, %v1127_v17  ;;  %v1227_v53 = vmul.f32 %v1946_v63, %v997_v57  ;;  %v2532_v7 = vmov (!%p1748_p1), 0.0|0.0   ;;  %v2127_v63 = vpack.c.bf16 (!%p1748_p1), %v1474_v41, %v1473_v22 }
 0x217   : > { %2126 = vmatprep.subr.bf16.mxu0 (!%p1748_p1), %v2532_v7  ;;  %v2139_v57 = vpack.c.bf16 (!%p1748_p1), %v1482_v43, %v1481_v27 }
 0x218   : > { %v1379_v40 = vadd.f32 %v1378_v49, %v1227_v53  ;;  %v1420_v4 = vadd.f32 %v1419_v20, %v1258_v28  ;;  %2128 = vmatpush3.bf16.msra.mxu0 (!%p1748_p1), %v2127_v63  ;;  %v1485_v28 = vld [vmem:[#allocation9 + $0x60] sm:$0xff] (!%p1748_p1)  ;;  %v1486_v53 = vld [vmem:[#allocation9 + $0x68] sm:$0xff] (!%p1748_p1)  ;;  %v1487_v20 = vld [vmem:[#allocation9 + $0x70] sm:$0xff] (!%p1748_p1) }
 0x219   : > { %v1131_v59 = vpop.permute.xlu1 %1130  ;;  %v1064_v24 = vpop.permute.xlu0 %1063  ;;  %2129 = vmatprep.subr.bf16.mxu0 (!%p1748_p1), %v2532_v7  ;;  %v2145_v55 = vpack.c.bf16 (!%p1748_p1), %v1486_v53, %v1485_v28 }
 0x21a   : > { %v1380_v56 = vrot.slane %v1379_v40, 4  ;;  %v1259_v25 = vmul.f32 %v2010_v33, %v1131_v59  ;;  %v1243_v50 = vmul.f32 %v1978_v35, %v1064_v24  ;;  %v2534_v33 = vmov (!%p1748_p1), 0.0   ;;  %v1483_v35 = vld [vmem:[#allocation9 + $0x50] sm:$0xff] (!%p1748_p1) }
 0x21b   : > { %2123 = vmatprep.mubr.msk.f32.mxu0 (!%p1748_p1), %vm2533_vm10, %v2534_v33  ;;  %v2142_v49 = vpack.c.bf16 (!%p1748_p1), %v1484_v16, %v1483_v35 }
 0x21c   : > { %v1381_v11 = vadd.f32 %v1380_v56, %v1379_v40  ;;  %v1421_v21 = vadd.f32 %v1420_v4, %v1259_v25  ;;  %v1400_v32 = vadd.f32 %v1399_v19, %v1243_v50  ;;  %2131 = vmatpush3.bf16.msra.mxu0 (!%p1748_p1), %v2130_v62  ;;  %v1488_v40 = vld [vmem:[#allocation9 + $0x78] sm:$0xff] (!%p1748_p1)  ;;  %v3265_v56 = vlaneseq (!%p1748_p1)  ;;  %v1749_v50 = vld [vmem:[#allocation10] ss:$0 sm:$0xff] (!%p1748_p1) }
 0x21d   : > { %2132 = vmatprep.subr.bf16.mxu0 (!%p1748_p1), %v2532_v7  ;;  %v2148_v19 = vpack.c.bf16 (!%p1748_p1), %v1488_v40, %v1487_v20 }
 0x21e   : > { %v1382_v46 = vrot.slane %v1381_v11, 2  ;;  %v1422_v52 = vrot.slane %v1421_v21, 4  ;;  %v1401_v54 = vrot.slane %v1400_v32, 4  ;;  %v1567_v25 = vand.u32 (!%p1748_p1), 127, %v3265_v56 }
 0x220   : > { %v1383_v45 = vadd.f32 %v1382_v46, %v1381_v11  ;;  %v1423_v23 = vadd.f32 %v1422_v52, %v1421_v21  ;;  %v1402_v29 = vadd.f32 %v1401_v54, %v1400_v32  ;;  %2134 = vmatpush3.bf16.msra.mxu0 (!%p1748_p1), %v2133_v10  ;;  %vm1568_vm11 = vcmp.lt.s32.totalorder (!%p1748_p1), %v1567_v25, 5 }
 0x221   : > { %2135 = vmatprep.subr.bf16.mxu0 (!%p1748_p1), %v2532_v7 }
 0x222   : > { %v1384_v39 = vrot.slane %v1383_v45, 1  ;;  %v1424_v5 = vrot.slane %v1423_v23, 2  ;;  %v1403_v14 = vrot.slane %v1402_v29, 2 }
 0x224   : > { %v1425_v31 = vadd.f32 %v1424_v5, %v1423_v23  ;;  %v1404_v51 = vadd.f32 %v1403_v14, %v1402_v29  ;;  %v1385_v13 = vadd.f32 %v1384_v39, %v1383_v45  ;;  %2137 = vmatpush3.bf16.msra.mxu0 (!%p1748_p1), %v2136_v36 }
 0x225   : > { %2138 = vmatprep.subr.bf16.mxu0 (!%p1748_p1), %v2532_v7 }
 0x226   : > { %v1426_v58 = vrot.slane %v1425_v31, 1  ;;  %v1405_v61 = vrot.slane %v1404_v51, 1  ;;  %v1445_v34 = vsel %vm1444_vm6, %v1385_v13, %v3264_v26 }
 0x228   : > { %v1427_v9 = vadd.f32 %v1426_v58, %v1425_v31  ;;  %v1406_v0 = vadd.f32 %v1405_v61, %v1404_v51  ;;  %2140 = vmatpush3.bf16.msra.mxu0 (!%p1748_p1), %v2139_v57 }
 0x229   : > { %2141 = vmatprep.subr.bf16.mxu0 (!%p1748_p1), %v2532_v7 }
 0x22a   : > { %v1447_v30 = vsel %vm1446_vm7, %v1406_v0, %v1445_v34 }
 0x22b   : > { %v1449_v6 = vsel %vm1448_vm8, %v1427_v9, %v1447_v30 }
 0x22c   : > { %v1451_v48 = vadd.f32 %v1449_v6, %v595_v38  ;;  %2143 = vmatpush3.bf16.msra.mxu0 (!%p1748_p1), %v2142_v49 }
 0x22d   : > { %2144 = vmatprep.subr.bf16.mxu0 (!%p1748_p1), %v2532_v7 }
 0x22e   : > { %1452 = vst [vmem:[#allocation2] sm:$0xff] %v1451_v48 }
 0x230   : > { %2146 = vmatpush3.bf16.msra.mxu0 (!%p1748_p1), %v2145_v55 }
 0x231   : > { %2147 = vmatprep.subr.bf16.mxu0 (!%p1748_p1), %v2532_v7 }
 0x234   : > { %2149 = vmatpush3.bf16.msra.mxu0 (!%p1748_p1), %v2148_v19 }
 0x235   : > { %v1466_v59 = vld [vmem:[#allocation2] sm:$0xff] (!%p1748_p1) }
 0x250   : > { %1462 = sbr.rel (%p1748_p1) target bundleno = 1280 (0x500), region = 60 }
 0x253   : > { %v1455_v42 = vpop.xlane.xlu0 %1454 }
 0x254   : > { %v1456_v44 = vadd.f32 %v1455_v42, %v1453_v60 }
 0x256   : > { %1458 = vst.msk [vmem:[#allocation3] sm:$0xff] %vm1457_vm9, %v1456_v44 }
 0x25d   : > { %v1463_v8 = vld [vmem:[#allocation3] sm:$0xff] }
 0x25e   : > { %v1464_v15 = vadd.f32 1e-10, %v1463_v8 }
 0x260   : > { %2292 = vrcp.f32 %v1464_v15 }
 0x26a   : > { %v2293_v17 = vpop.eup %2292 }
 0x26b   : > { %1469 = vperm.xlu0 %2291, %v2293_v17  }
 0x2ea   : > { %v1470_v24 = vpop.permute.xlu0 %1469 }
 0x2eb   : > { %v1472_v4 = vmul.f32 %v1470_v24, %v1466_v59 }
 0x2ed   : > { %2124 = vmatmul.mubr.f32.vlgmr.msra.gmra.mrb[0].mxu0 %v1472_v4 }
 0x3c0   : > { %v1562_v11 = vpop.f32.mrb[0].mxu0 }
 0x3c1   : > { %v1563_v21 = vadd.f32 %v1749_v50, %v1562_v11  ;;  %v2125_v32 = vpop.f32.mrb[1].mxu0 }
 0x3c3   : > { %v1569_v46 = vsel %vm1568_vm11, %v1563_v21, -inf }
 0x3c4   : > { %1570 = vmax.xlane.f32.xlu0 %v1569_v46 }
 0x451   : > { %v1571_v52 = vpop.xlane.xlu0 %1570 }
 0x452   : > { %v1572_v54 = vsub.f32 %v1569_v46, %v1571_v52 }
 0x454   : > { %v1573_v45 = vmul.f32 1.442695, %v1572_v54 }
 0x456   : > { %2294 = vpow2.f32 %v1573_v45 }
 0x460   : > { %v2295_v23 = vpop.eup %2294 }
 0x461   : > { %v1575_v29 = vsel %vm1568_vm11, %v2295_v23, 0.0 }
 0x462   : > { %1576 = vadd.xlane.f32.xlu1 %v1575_v29 }
 0x4ef   : > { %v1577_v39 = vpop.xlane.xlu1 %1576 }
 0x4f0   : > { %2296 = vlog2.f32 %v1577_v39 }
 0x4fa   : > { %v2297_v5 = vpop.eup %2296 }
 0x4fb   : > { %v1579_v14 = vmul.f32 0.6931472, %v2297_v5 }
 0x4fd   : > { %v1580_v31 = vsub.f32 %v1572_v54, %v1579_v14 }
 0x4ff   : > { %1581 = vst [vmem:[%s325_s8] sm:$0xff] %v1580_v31 }
 0x500 PF: > { %s1751_s21 = sshll.u32 %s2504_s22, 7  ;;  %s3266_s17 = sld [smem:[#allocation29_spill]] }
 0x501   : > { %s1596_s7 = sshll.u32 %s325_s8, 4  ;;  %s1583_s5 = scalar_lea.sflag [#allocation6], %s323_s18  ;;  %s1597_s7 = int_to_ptr.vmem [resolvable:$true] %s1596_s7 }
 0x502   : > { %s2382_s29 = scalar_lea.vmem %s1597_s7, 128  ;;  %p3268_p8 = scmp.ne.s32.totalorder %s3249_s11, 0 }
 0x503   : > { %p2383_p2 = scmp.ne.s32.totalorder %s1597_s7, %s2382_s29  ;;  %s2535_s15 = smov [#allocation12]  }
 0x504   : > { %s2386_s12 = sshll.u32 %s2535_s15, 4  ;;  %s2387_s12 = int_to_ptr.vmem [resolvable:$false] %s2386_s12 }
 0x505   : > { %p2384_p6 = pnand %p2383_p2, %p3268_p8  ;;  %s2388_s14 = scalar_lea.vmem %s2387_s12, 256 }
 0x506   : > { %s3267_s28 = smov %s3266_s17  ;;  %s3165_s10 = scalar_lea.hbm %s3266_s17, %s1751_s21 }
 0x507   : > { %p2385_p9 = pneg %p2384_p6  ;;  %p2389_p3 = scmp.lt.s32.totalorder %s1597_s7, %s2387_s12 }
 0x508   : > { %p2390_p4 = scmp.lt.s32.totalorder %s2388_s14, %s2382_s29 }
 0x50a   : > { %p2391_p7 = por %p2390_p4, %p2389_p3 }
 0x50c   : > { %p2392_p12 = pnand %p2391_p7, %p2385_p9 }
 0x50e   : > { %2395 = shalt.err (!%p2392_p12)
}
 0x50f   : > { %s2396_s22 = scalar_lea.hbm %s3165_s10, 128  ;;  %s2400_s30 = scalar_lea.hbm %s3267_s28, 256 }
 0x510   : > { %p2397_p11 = scmp.ne.s32.totalorder %s3165_s10, %s2396_s22  ;;  %p2401_p13 = scmp.lt.u32.totalorder %s3165_s10, %s3267_s28 }
 0x511   : > { %p2402_p0 = scmp.lt.u32.totalorder %s2400_s30, %s2396_s22  ;;  %p2404_p2 = scmp.lt.u32.totalorder %s2396_s22, %s3165_s10 }
 0x512   : > { %p2398_p5 = pnand %p2397_p11, %p3268_p8 }
 0x513   : > { %p2403_p1 = por %p2402_p0, %p2401_p13 }
 0x514   : > { %p2399_p10 = pneg %p2398_p5 }
 0x515   : > { %p2405_p6 = por %p2404_p2, %p2403_p1 }
 0x517   : > { %p2406_p9 = pnand %p2405_p6, %p2399_p10 }
 0x519   : > { %2409 = shalt.err (!%p2406_p9)
}
 0x51a   : > { %2169 = dma.vmem_to_hbm [thread:$0]  (%p3268_p8), %s1597_s7, 128, %s3165_s10, %s1583_s5  }
 0x51b PF: > { %s3269_s27 = sld [smem:[#allocation21_spill]]  ;;  %s3270_s8 = sld [smem:[#allocation27_spill]] }
 0x51c   : > { %p2186_p3 = scmp.ge.s32.totalorder %s2516_s25, 2 }
 0x521   : > { %s1608_s21 = sand.u32 1, %s3269_s27   ;;  %p3271_p4 = scmp.ne.s32.totalorder %s3270_s8, 0 }
 0x522   : > { %s1609_s26 = scalar_lea.sflag [#allocation6], %s1608_s21 }
 0x523   : > { %p2179_p7 = pnand %p2186_p3, %p3271_p4 }
 0x525   : > { %2471 = dma.done.wait (!%p2179_p7), %s1609_s26, 128  }
 0x526   : > { %2473 = vsyncadd (!%p2179_p7), %s1609_s26, 4294967168  ;;  %s24_s25 = sadd.s32 1, %s2516_s25   ;;  %s3272_s13 = sld [smem:[#allocation22_spill]] }
 0x527   : > { %p21_p12 = scmp.ge.s32.totalorder %s24_s25, 6   ;;  %s3273_s17 = sld [smem:[#allocation25_spill]] }
 0x528   : > { %s3274_s11 = sld [smem:[#allocation26_spill]]  ;;  %s3275_s10 = sld [smem:[#allocation23_spill]] }
 0x529   : > { %s3276_s7 = sld [smem:[#allocation24_spill]]  ;;  %s3277_s15 = smov %s2480_s16 }
 0x52a   : > { %s3279_s18 = smov %s2492_s19  ;;  %s3280_s19 = smov %s2496_s20 }
 0x52b   : > { %s3282_s21 = smov %s2508_s23  ;;  %s3283_s22 = smov %s2512_s24 }
 0x52c   : > { %s3278_s16 = smov %s3272_s13  ;;  %23 = sbr.rel (!%p21_p12) target bundleno = 14 (0xe), region = 115 }
 0x52e   : > { %s3281_s20 = smov %s3274_s11  ;;  %s3284_s23 = smov %s3275_s10 }
 0x52f   : > { %s3285_s24 = smov %s3276_s7 }
 0x533   :  { %1614 = vsyncpa [#allocation5], 1 }
 0x534   :  { %1616 = vsyncpa [#allocation5 + $0x1], 1 }
 0x535   :  { %1617 = vsyncpa [#allocation8], 1 }
 0x536   :  { %1619 = vsyncpa [#allocation8 + $0x1], 1 }
 0x537   :  { %1620 = vsyncpa [#allocation11], 1 }
 0x538   :  { %1621 = vsyncpa [#allocation6], 1 }
 0x539   :  { %1623 = vsyncpa [#allocation6 + $0x1], 1 }

</bundles_post_ra>
